<compile_context>
chip_gen: v5e
topology: v5e:2x2
jax: 0.10.0
libtpu: 0.0.40
codegen_flags: <defaults>
</compile_context>

<pallas_src>
import functools

import numpy as np
import jax
import jax.numpy as jnp
from jax.experimental import pallas as pl
from jax.experimental.pallas import tpu as pltpu


# ----------------------------------------------------------------------------
# Fused kernel: both streams + reconstruction + contrastive losses
# ----------------------------------------------------------------------------
def _moco_fused_kernel(x_t_ref, x_s_ref, nq_ref, nk_ref,
                       we_t_ref, wp_t_ref, wd_t_ref,
                       we_s_ref, wp_s_ref, wd_s_ref,
                       queue_ref, rrep_ref, jmat_ref,
                       xrec_t_ref, xrec_s_ref, loss_ref,
                       kc_ref, *, inv_temp, num_graphs, num_nodes):
    f32 = jnp.float32
    bf16 = jnp.bfloat16
    B, N = num_graphs, num_nodes
    BN, D = x_t_ref.shape
    H = we_t_ref.shape[-1]
    C = wp_t_ref.shape[-1]

    nq = nq_ref[...]                              # shared q-augmentation noise
    nk = nk_ref[...]                              # shared k-augmentation noise

    def pool_project(h, w_proj):
        # Graph readout: mean over nodes (replaces the pooling matmul) then a
        # tiny projection.  h is (2B*N, H) with graph-major / node-minor rows.
        pooled = jnp.mean(h.reshape(2 * B, N, H), axis=1)               # (2B, H)
        return jnp.dot(pooled, w_proj, preferred_element_type=f32)      # (2B, C)

    def run_stream(x_ref, we_ref, wp_ref, wd_ref, xrec_ref, sidx):
        x = x_ref[...]                                                   # (BN, D)
        # Batched augmented views: rows = [x_q ; x_k]   (one encode matmul)
        xa = jnp.concatenate([x + nq, x + nk], axis=0)                   # (2BN, D)

        w_enc = we_ref[...].astype(bf16)
        w_proj = wp_ref[...]
        w_dec = wd_ref[...].astype(bf16)

        # encode (bf16 MXU operands, f32 accumulation) + readouts
        h = jnp.maximum(jnp.dot(xa.astype(bf16), w_enc,
                                preferred_element_type=f32), 0.0)        # (2BN, H)
        ro1 = pool_project(h, w_proj)                                    # (2B, C)

        # decode -> reconstructions of [q-aug ; k-aug] graphs, single store
        rec = jnp.dot(h.astype(bf16), w_dec, preferred_element_type=f32)  # (2BN, D)
        xrec_ref[...] = rec

        # reconstruction MSE vs cat([x, x])  -> SMEM scalar
        dq = rec[:BN, :] - x
        dk = rec[BN:, :] - x
        loss_ref[sidx] = (jnp.sum(dq * dq) + jnp.sum(dk * dk)) / float(2 * BN * D)

        # re-encode the reconstructions (key branch of the mix)
        h2 = jnp.maximum(jnp.dot(rec.astype(bf16), w_enc,
                                 preferred_element_type=f32), 0.0)       # (2BN, H)
        ro2 = pool_project(h2, w_proj)                                   # (2B, C)

        # Scatter this stream's key readouts into the "chunk" scratch laid out
        # as chunk[b, r*C:(r+1)*C] = k_mix[6*b + r, :], so the PyTorch
        # k_mix.view(B, C, 6) reinterpretation becomes pure matmul algebra.
        # k_mix row order: [ro(x_k_t); ro(rec_q_t); ro(rec_k_t);
        #                   ro(x_k_s); ro(rec_q_s); ro(rec_k_s)]
        key_blocks = (ro1[B:2 * B, :], ro2[0:B, :], ro2[B:2 * B, :])
        for gi, blk in enumerate(key_blocks):
            g = 3 * sidx + gi
            for u in range(B):
                m = g * B + u                      # row index in k_mix
                bb, rr = m // 6, m % 6
                kc_ref[bb:bb + 1, rr * C:(rr + 1) * C] = blk[u:u + 1, :]

        return ro1[0:B, :]                         # q readout (B, C)

    q_t = run_stream(x_t_ref, we_t_ref, wp_t_ref, wd_t_ref, xrec_t_ref, 0)
    q_s = run_stream(x_s_ref, we_s_ref, wp_s_ref, wd_s_ref, xrec_s_ref, 1)

    # ------------------------------------------------------------------
    # Fused contrastive loss (positives + queue negatives + label-0 CE)
    # ------------------------------------------------------------------
    chunk = kc_ref[...]                            # (B, 6C): chunk[b, i] = k_mix_flat[6*C*b + i]
    rrep = rrep_ref[...]                           # (C, 6C): [i // 6 == c]
    jmat = jmat_ref[...]                           # (6C, 6): [i %  6 == j]
    queue = queue_ref[...]                         # (Q, C)

    def contrastive(q, idx):
        # pos[b, j] = sum_c q[b, c] * k_mix.view(B, C, 6)[b, c, j]
        #           = sum_i chunk[b, i] * q[b, i//6] * [i % 6 == j]
        qrep = jnp.dot(q, rrep, preferred_element_type=f32)             # (B, 6C)
        z_pos = jnp.dot(chunk * qrep, jmat,
                        preferred_element_type=f32) * inv_temp          # (B, 6)
        # negatives: q @ queue.T without materializing a transpose
        z_neg = jax.lax.dot_general(q, queue, (((1,), (1,)), ((), ())),
                                    preferred_element_type=f32) * inv_temp  # (B, Q)
        # label-0 cross entropy via logsumexp over [pos | neg] (no concat)
        m = jnp.maximum(jnp.max(z_pos, axis=-1, keepdims=True),
                        jnp.max(z_neg, axis=-1, keepdims=True))
        se = (jnp.sum(jnp.exp(z_pos - m), axis=-1, keepdims=True)
              + jnp.sum(jnp.exp(z_neg - m), axis=-1, keepdims=True))
        ce = m + jnp.log(se) - z_pos[:, 0:1]                            # (B, 1)
        loss_ref[2 + idx] = jnp.sum(ce) / float(B)

    contrastive(q_t, 0)
    contrastive(q_s, 1)


# ----------------------------------------------------------------------------
# Host-side constants reproducing the torch `.view(B, C, 6)` index algebra
# ----------------------------------------------------------------------------
def _view_constants(C):
    i = np.arange(6 * C)
    rrep = (i[None, :] // 6 == np.arange(C)[:, None]).astype(np.float32)   # (C, 6C)
    jmat = (i[:, None] % 6 == np.arange(6)[None, :]).astype(np.float32)    # (6C, 6)
    return jnp.asarray(rrep), jnp.asarray(jmat)


# ----------------------------------------------------------------------------
# MoCo forward
# ----------------------------------------------------------------------------
def moco_forward(x_t, x_s, params, queue, temperature, noise_level=0.2):
    B, N, D = x_t.shape
    BN = B * N
    C = params["W_proj_t"].shape[-1]

    # drop_ratio=0.0 in the reference forward -> augmentation is additive
    # Gaussian noise only (seeds 88 / 32, same draw for both streams because
    # the reference re-seeds per call).
    n_q = noise_level * jax.random.normal(jax.random.PRNGKey(88), (BN, D), jnp.float32)
    n_k = noise_level * jax.random.normal(jax.random.PRNGKey(32), (BN, D), jnp.float32)

    rrep, jmat = _view_constants(C)

    kern = functools.partial(_moco_fused_kernel,
                             inv_temp=1.0 / float(temperature),
                             num_graphs=B, num_nodes=N)

    vmem = pl.BlockSpec(memory_space=pltpu.MemorySpace.VMEM)
    smem = pl.BlockSpec(memory_space=pltpu.MemorySpace.SMEM)

    x_rec_t, x_rec_s, losses = pl.pallas_call(
        kern,
        out_shape=(jax.ShapeDtypeStruct((2 * BN, D), jnp.float32),   # x_rec_t
                   jax.ShapeDtypeStruct((2 * BN, D), jnp.float32),   # x_rec_s
                   jax.ShapeDtypeStruct((4,), jnp.float32)),         # losses (SMEM)
        in_specs=[vmem] * 13,
        out_specs=(vmem, vmem, smem),
        scratch_shapes=[pltpu.VMEM((B, 6 * C), jnp.float32)],        # k_mix chunk
    )(x_t.reshape(BN, D), x_s.reshape(BN, D), n_q, n_k,
      params["W_enc_t"], params["W_proj_t"], params["W_dec_t"],
      params["W_enc_s"], params["W_proj_s"], params["W_dec_s"],
      queue, rrep, jmat)

    loss_rec_t, loss_rec_s = losses[0], losses[1]
    loss_cl_t, loss_cl_s = losses[2], losses[3]
    loss = loss_rec_t + loss_rec_s + loss_cl_t + loss_cl_s
    return (loss, loss_rec_t, loss_rec_s, loss_cl_t, loss_cl_s,
            x_rec_t.reshape(2 * B, N, D), x_rec_s.reshape(2 * B, N, D))


# ----------------------------------------------------------------------------
# Pure-JAX reference (same math incl. bf16 matmul operands) for validation
# ----------------------------------------------------------------------------
def _reference_forward(x_t, x_s, params, queue, temperature, noise_level=0.2):
    f32, bf16 = jnp.float32, jnp.bfloat16
    B, N, D = x_t.shape
    BN = B * N
    H = params["W_enc_t"].shape[-1]
    n_q = noise_level * jax.random.normal(jax.random.PRNGKey(88), (BN, D), f32)
    n_k = noise_level * jax.random.normal(jax.random.PRNGKey(32), (BN, D), f32)

    def stream(x, we, wp, wd):
        xa = jnp.concatenate([x + n_q, x + n_k], axis=0)
        h = jnp.maximum(jnp.dot(xa.astype(bf16), we.astype(bf16),
                                preferred_element_type=f32), 0.0)
        ro1 = jnp.dot(jnp.mean(h.reshape(2 * B, N, H), axis=1), wp,
                      preferred_element_type=f32)
        rec = jnp.dot(h.astype(bf16), wd.astype(bf16), preferred_element_type=f32)
        loss_rec = jnp.mean((rec - jnp.concatenate([x, x], axis=0)) ** 2)
        h2 = jnp.maximum(jnp.dot(rec.astype(bf16), we.astype(bf16),
                                 preferred_element_type=f32), 0.0)
        ro2 = jnp.dot(jnp.mean(h2.reshape(2 * B, N, H), axis=1), wp,
                      preferred_element_type=f32)
        keys = jnp.concatenate([ro1[B:], ro2], axis=0)        # (3B, C)
        return rec, loss_rec, ro1[:B], keys

    rec_t, lrec_t, q_t, keys_t = stream(x_t.reshape(BN, D), params["W_enc_t"],
                                        params["W_proj_t"], params["W_dec_t"])
    rec_s, lrec_s, q_s, keys_s = stream(x_s.reshape(BN, D), params["W_enc_s"],
                                        params["W_proj_s"], params["W_dec_s"])

    k_mix = jnp.concatenate([keys_t, keys_s], axis=0)         # (6B, C)
    C = k_mix.shape[-1]
    k_view = k_mix.reshape(B, C, 6)                           # torch .view(-1, C, 6)

    def cl(q):
        pos = jnp.einsum('bc,bcj->bj', q, k_view)
        neg = q @ queue.T
        logits = jnp.concatenate([pos, neg], axis=1) / temperature
        lse = jax.scipy.special.logsumexp(logits, axis=-1)
        return jnp.mean(lse - logits[:, 0])

    lcl_t, lcl_s = cl(q_t), cl(q_s)
    loss = lrec_t + lrec_s + lcl_t + lcl_s
    return (loss, lrec_t, lrec_s, lcl_t, lcl_s,
            rec_t.reshape(2 * B, N, D), rec_s.reshape(2 * B, N, D))


# ----------------------------------------------------------------------------
# Parameter / buffer construction (deterministic, in-script)
# ----------------------------------------------------------------------------
def make_params(key, feat_dim, hidden_dim, out_channels):
    ks = jax.random.split(key, 6)
    scale = 0.1
    return {
        "W_enc_t": scale * jax.random.normal(ks[0], (feat_dim, hidden_dim), jnp.float32),
        "W_proj_t": scale * jax.random.normal(ks[1], (hidden_dim, out_channels), jnp.float32),
        "W_dec_t": scale * jax.random.normal(ks[2], (hidden_dim, feat_dim), jnp.float32),
        "W_enc_s": scale * jax.random.normal(ks[3], (feat_dim, hidden_dim), jnp.float32),
        "W_proj_s": scale * jax.random.normal(ks[4], (hidden_dim, out_channels), jnp.float32),
        "W_dec_s": scale * jax.random.normal(ks[5], (hidden_dim, feat_dim), jnp.float32),
    }


def make_queue(key, queue_size, out_channels):
    q = jax.random.normal(key, (queue_size, out_channels), jnp.float32)
    return q / jnp.linalg.norm(q, axis=1, keepdims=True)   # F.normalize(dim=1)


if __name__ == "__main__":
    # Small shapes: batch=2, nodes=8, feat=16, hidden=32, out_channels=16,
    # queue_size=32.  momentum (0.999) is unused in the forward pass.
    B, N, D, H = 2, 8, 16, 32
    OUT_CHANNELS = 16
    QUEUE_SIZE = 32
    TEMPERATURE = 0.07

    root = jax.random.PRNGKey(0)
    k_xt, k_xs, k_par, k_queue = jax.random.split(root, 4)

    x_t = jax.random.normal(k_xt, (B, N, D), jnp.float32)
    x_s = jax.random.normal(k_xs, (B, N, D), jnp.float32)

    params = make_params(k_par, D, H, OUT_CHANNELS)
    queue = make_queue(k_queue, QUEUE_SIZE, OUT_CHANNELS)

    fwd = jax.jit(functools.partial(moco_forward, temperature=TEMPERATURE))
    out = jax.block_until_ready(fwd(x_t, x_s, params, queue))
    loss, loss_rec_t, loss_rec_s, loss_cl_t, loss_cl_s, x_rec_t, x_rec_s = out

    assert x_rec_t.shape == (2 * B, N, D) and x_rec_s.shape == (2 * B, N, D)
    assert bool(jnp.isfinite(loss))

    # cross-check against the pure-JAX reference (loose tol for bf16/MXU drift)
    ref = jax.jit(functools.partial(_reference_forward,
                                    temperature=TEMPERATURE))(x_t, x_s, params, queue)
    for got, exp in zip(out[:5], ref[:5]):
        assert jnp.allclose(got, exp, rtol=5e-2, atol=5e-2)
    assert jnp.allclose(x_rec_t, ref[5], rtol=5e-2, atol=5e-2)
    assert jnp.allclose(x_rec_s, ref[6], rtol=5e-2, atol=5e-2)

    print("KERNEL_OK")
</pallas_src>

<mosaic_0001>
module attributes {stable_mosaic.version = 11 : i64} {
  func.func @_moco_fused_kernel(%arg0: memref<16x16xf32, #tpu.memory_space<vmem>>, %arg1: memref<16x16xf32, #tpu.memory_space<vmem>>, %arg2: memref<16x16xf32, #tpu.memory_space<vmem>>, %arg3: memref<16x16xf32, #tpu.memory_space<vmem>>, %arg4: memref<16x32xf32, #tpu.memory_space<vmem>>, %arg5: memref<32x16xf32, #tpu.memory_space<vmem>>, %arg6: memref<32x16xf32, #tpu.memory_space<vmem>>, %arg7: memref<16x32xf32, #tpu.memory_space<vmem>>, %arg8: memref<32x16xf32, #tpu.memory_space<vmem>>, %arg9: memref<32x16xf32, #tpu.memory_space<vmem>>, %arg10: memref<32x16xf32, #tpu.memory_space<vmem>>, %arg11: memref<16x96xf32, #tpu.memory_space<vmem>>, %arg12: memref<96x6xf32, #tpu.memory_space<vmem>>, %arg13: memref<32x16xf32, #tpu.memory_space<vmem>>, %arg14: memref<32x16xf32, #tpu.memory_space<vmem>>, %arg15: memref<4xf32, #tpu.memory_space<smem>>, %arg16: memref<2x96xf32, #tpu.memory_space<vmem>>) attributes {dimension_semantics = [], scalar_prefetch = 0 : i64, scratch_operands = 1 : i64, tpu.core_type = #tpu.core_type<tc>} {
    %c0 = arith.constant 0 : index
    %c0_0 = arith.constant 0 : index
    %0 = vector.load %arg2[%c0, %c0_0] : memref<16x16xf32, #tpu.memory_space<vmem>>, vector<16x16xf32>
    %c0_1 = arith.constant 0 : index
    %c0_2 = arith.constant 0 : index
    %1 = vector.load %arg3[%c0_1, %c0_2] : memref<16x16xf32, #tpu.memory_space<vmem>>, vector<16x16xf32>
    %c0_3 = arith.constant 0 : index
    %c0_4 = arith.constant 0 : index
    %2 = vector.load %arg0[%c0_3, %c0_4] : memref<16x16xf32, #tpu.memory_space<vmem>>, vector<16x16xf32>
    %3 = arith.addf %2, %0 : vector<16x16xf32>
    %4 = arith.addf %2, %1 : vector<16x16xf32>
    %5 = tpu.concatenate %3, %4 in 0 : vector<16x16xf32>, vector<16x16xf32> -> vector<32x16xf32>
    %c0_5 = arith.constant 0 : index
    %c0_6 = arith.constant 0 : index
    %6 = vector.load %arg4[%c0_5, %c0_6] : memref<16x32xf32, #tpu.memory_space<vmem>>, vector<16x32xf32>
    %7 = arith.truncf %6 : vector<16x32xf32> to vector<16x32xbf16>
    %c0_7 = arith.constant 0 : index
    %c0_8 = arith.constant 0 : index
    %8 = vector.load %arg5[%c0_7, %c0_8] : memref<32x16xf32, #tpu.memory_space<vmem>>, vector<32x16xf32>
    %c0_9 = arith.constant 0 : index
    %c0_10 = arith.constant 0 : index
    %9 = vector.load %arg6[%c0_9, %c0_10] : memref<32x16xf32, #tpu.memory_space<vmem>>, vector<32x16xf32>
    %10 = arith.truncf %9 : vector<32x16xf32> to vector<32x16xbf16>
    %11 = arith.truncf %5 : vector<32x16xf32> to vector<32x16xbf16>
    %cst = arith.constant dense<0.000000e+00> : vector<32x32xf32>
    %12 = tpu.matmul %11, %7, %cst {dimension_numbers = #tpu.dot_dimension_numbers<[1], [0], [0], [1], [0, 0, 1, 1], [], []>} : vector<32x16xbf16>, vector<16x32xbf16>, vector<32x32xf32> -> vector<32x32xf32>
    %cst_11 = arith.constant 0.000000e+00 : f32
    %13 = vector.broadcast %cst_11 : f32 to vector<32x32xf32>
    %14 = arith.maximumf %12, %13 : vector<32x32xf32>
    %15 = vector.shape_cast %14 : vector<32x32xf32> to vector<4x8x32xf32>
    %cst_12 = arith.constant dense<0.000000e+00> : vector<4x32xf32>
    %16 = vector.multi_reduction <add>, %15, %cst_12 [1] : vector<4x8x32xf32> to vector<4x32xf32>
    %cst_13 = arith.constant 8.000000e+00 : f32
    %17 = vector.broadcast %cst_13 : f32 to vector<4x32xf32>
    %18 = arith.divf %16, %17 : vector<4x32xf32>
    %cst_14 = arith.constant dense<0.000000e+00> : vector<4x16xf32>
    %19 = tpu.matmul %18, %8, %cst_14 {dimension_numbers = #tpu.dot_dimension_numbers<[1], [0], [0], [1], [0, 0, 1, 1], [], []>} : vector<4x32xf32>, vector<32x16xf32>, vector<4x16xf32> -> vector<4x16xf32>
    %20 = arith.truncf %14 : vector<32x32xf32> to vector<32x32xbf16>
    %cst_15 = arith.constant dense<0.000000e+00> : vector<32x16xf32>
    %21 = tpu.matmul %20, %10, %cst_15 {dimension_numbers = #tpu.dot_dimension_numbers<[1], [0], [0], [1], [0, 0, 1, 1], [], []>} : vector<32x32xbf16>, vector<32x16xbf16>, vector<32x16xf32> -> vector<32x16xf32>
    %c0_16 = arith.constant 0 : index
    %c0_17 = arith.constant 0 : index
    %22 = vector.load %arg13[%c0_16, %c0_17] : memref<32x16xf32, #tpu.memory_space<vmem>>, vector<32x16xf32>
    tpu.vector_store %arg13[%c0_16, %c0_17], %21 {strides = array<i32>} : memref<32x16xf32, #tpu.memory_space<vmem>>, vector<32x16xf32>,
    %23 = vector.extract_strided_slice %21 {offsets = [0, 0], sizes = [16, 16], strides = [1, 1]} : vector<32x16xf32> to vector<16x16xf32>
    %24 = arith.subf %23, %2 : vector<16x16xf32>
    %25 = vector.extract_strided_slice %21 {offsets = [16, 0], sizes = [16, 16], strides = [1, 1]} : vector<32x16xf32> to vector<16x16xf32>
    %26 = arith.subf %25, %2 : vector<16x16xf32>
    %27 = arith.mulf %24, %24 : vector<16x16xf32>
    %28 = vector.shape_cast %27 : vector<16x16xf32> to vector<1x16x16xf32>
    %cst_18 = arith.constant dense<0.000000e+00> : vector<1xf32>
    %29 = vector.multi_reduction <add>, %28, %cst_18 [1, 2] : vector<1x16x16xf32> to vector<1xf32>
    %30 = vector.shape_cast %29 : vector<1xf32> to vector<1x1x1xf32>
    %31 = vector.extract %30[0, 0, 0] : f32 from vector<1x1x1xf32>
    %32 = arith.mulf %26, %26 : vector<16x16xf32>
    %33 = vector.shape_cast %32 : vector<16x16xf32> to vector<1x16x16xf32>
    %cst_19 = arith.constant dense<0.000000e+00> : vector<1xf32>
    %34 = vector.multi_reduction <add>, %33, %cst_19 [1, 2] : vector<1x16x16xf32> to vector<1xf32>
    %35 = vector.shape_cast %34 : vector<1xf32> to vector<1x1x1xf32>
    %36 = vector.extract %35[0, 0, 0] : f32 from vector<1x1x1xf32>
    %37 = arith.addf %31, %36 : f32
    %cst_20 = arith.constant 5.120000e+02 : f32
    %38 = arith.divf %37, %cst_20 : f32
    %c0_21 = arith.constant 0 : index
    %39 = memref.load %arg15[%c0_21] : memref<4xf32, #tpu.memory_space<smem>>
    memref.store %38, %arg15[%c0_21] : memref<4xf32, #tpu.memory_space<smem>>
    %40 = arith.truncf %21 : vector<32x16xf32> to vector<32x16xbf16>
    %cst_22 = arith.constant dense<0.000000e+00> : vector<32x32xf32>
    %41 = tpu.matmul %40, %7, %cst_22 {dimension_numbers = #tpu.dot_dimension_numbers<[1], [0], [0], [1], [0, 0, 1, 1], [], []>} : vector<32x16xbf16>, vector<16x32xbf16>, vector<32x32xf32> -> vector<32x32xf32>
    %cst_23 = arith.constant 0.000000e+00 : f32
    %42 = vector.broadcast %cst_23 : f32 to vector<32x32xf32>
    %43 = arith.maximumf %41, %42 : vector<32x32xf32>
    %44 = vector.shape_cast %43 : vector<32x32xf32> to vector<4x8x32xf32>
    %cst_24 = arith.constant dense<0.000000e+00> : vector<4x32xf32>
    %45 = vector.multi_reduction <add>, %44, %cst_24 [1] : vector<4x8x32xf32> to vector<4x32xf32>
    %cst_25 = arith.constant 8.000000e+00 : f32
    %46 = vector.broadcast %cst_25 : f32 to vector<4x32xf32>
    %47 = arith.divf %45, %46 : vector<4x32xf32>
    %cst_26 = arith.constant dense<0.000000e+00> : vector<4x16xf32>
    %48 = tpu.matmul %47, %8, %cst_26 {dimension_numbers = #tpu.dot_dimension_numbers<[1], [0], [0], [1], [0, 0, 1, 1], [], []>} : vector<4x32xf32>, vector<32x16xf32>, vector<4x16xf32> -> vector<4x16xf32>
    %49 = vector.extract_strided_slice %19 {offsets = [2, 0], sizes = [2, 16], strides = [1, 1]} : vector<4x16xf32> to vector<2x16xf32>
    %50 = vector.extract_strided_slice %48 {offsets = [0, 0], sizes = [2, 16], strides = [1, 1]} : vector<4x16xf32> to vector<2x16xf32>
    %51 = vector.extract_strided_slice %48 {offsets = [2, 0], sizes = [2, 16], strides = [1, 1]} : vector<4x16xf32> to vector<2x16xf32>
    %52 = vector.extract_strided_slice %49 {offsets = [0, 0], sizes = [1, 16], strides = [1, 1]} : vector<2x16xf32> to vector<1x16xf32>
    %c0_27 = arith.constant 0 : index
    %c0_28 = arith.constant 0 : index
    %53 = vector.load %arg16[%c0_27, %c0_28] : memref<2x96xf32, #tpu.memory_space<vmem>>, vector<1x16xf32>
    tpu.vector_store %arg16[%c0_27, %c0_28], %52 {strides = array<i32>} : memref<2x96xf32, #tpu.memory_space<vmem>>, vector<1x16xf32>,
    %54 = vector.extract_strided_slice %49 {offsets = [1, 0], sizes = [1, 16], strides = [1, 1]} : vector<2x16xf32> to vector<1x16xf32>
    %c0_29 = arith.constant 0 : index
    %c16 = arith.constant 16 : index
    %55 = vector.load %arg16[%c0_29, %c16] : memref<2x96xf32, #tpu.memory_space<vmem>>, vector<1x16xf32>
    tpu.vector_store %arg16[%c0_29, %c16], %54 {strides = array<i32>} : memref<2x96xf32, #tpu.memory_space<vmem>>, vector<1x16xf32>,
    %56 = vector.extract_strided_slice %50 {offsets = [0, 0], sizes = [1, 16], strides = [1, 1]} : vector<2x16xf32> to vector<1x16xf32>
    %c0_30 = arith.constant 0 : index
    %c32 = arith.constant 32 : index
    %57 = vector.load %arg16[%c0_30, %c32] : memref<2x96xf32, #tpu.memory_space<vmem>>, vector<1x16xf32>
    tpu.vector_store %arg16[%c0_30, %c32], %56 {strides = array<i32>} : memref<2x96xf32, #tpu.memory_space<vmem>>, vector<1x16xf32>,
    %58 = vector.extract_strided_slice %50 {offsets = [1, 0], sizes = [1, 16], strides = [1, 1]} : vector<2x16xf32> to vector<1x16xf32>
    %c0_31 = arith.constant 0 : index
    %c48 = arith.constant 48 : index
    %59 = vector.load %arg16[%c0_31, %c48] : memref<2x96xf32, #tpu.memory_space<vmem>>, vector<1x16xf32>
    tpu.vector_store %arg16[%c0_31, %c48], %58 {strides = array<i32>} : memref<2x96xf32, #tpu.memory_space<vmem>>, vector<1x16xf32>,
    %60 = vector.extract_strided_slice %51 {offsets = [0, 0], sizes = [1, 16], strides = [1, 1]} : vector<2x16xf32> to vector<1x16xf32>
    %c0_32 = arith.constant 0 : index
    %c64 = arith.constant 64 : index
    %61 = vector.load %arg16[%c0_32, %c64] : memref<2x96xf32, #tpu.memory_space<vmem>>, vector<1x16xf32>
    tpu.vector_store %arg16[%c0_32, %c64], %60 {strides = array<i32>} : memref<2x96xf32, #tpu.memory_space<vmem>>, vector<1x16xf32>,
    %62 = vector.extract_strided_slice %51 {offsets = [1, 0], sizes = [1, 16], strides = [1, 1]} : vector<2x16xf32> to vector<1x16xf32>
    %c0_33 = arith.constant 0 : index
    %c80 = arith.constant 80 : index
    %63 = vector.load %arg16[%c0_33, %c80] : memref<2x96xf32, #tpu.memory_space<vmem>>, vector<1x16xf32>
    tpu.vector_store %arg16[%c0_33, %c80], %62 {strides = array<i32>} : memref<2x96xf32, #tpu.memory_space<vmem>>, vector<1x16xf32>,
    %64 = vector.extract_strided_slice %19 {offsets = [0, 0], sizes = [2, 16], strides = [1, 1]} : vector<4x16xf32> to vector<2x16xf32>
    %c0_34 = arith.constant 0 : index
    %c0_35 = arith.constant 0 : index
    %65 = vector.load %arg1[%c0_34, %c0_35] : memref<16x16xf32, #tpu.memory_space<vmem>>, vector<16x16xf32>
    %66 = arith.addf %65, %0 : vector<16x16xf32>
    %67 = arith.addf %65, %1 : vector<16x16xf32>
    %68 = tpu.concatenate %66, %67 in 0 : vector<16x16xf32>, vector<16x16xf32> -> vector<32x16xf32>
    %c0_36 = arith.constant 0 : index
    %c0_37 = arith.constant 0 : index
    %69 = vector.load %arg7[%c0_36, %c0_37] : memref<16x32xf32, #tpu.memory_space<vmem>>, vector<16x32xf32>
    %70 = arith.truncf %69 : vector<16x32xf32> to vector<16x32xbf16>
    %c0_38 = arith.constant 0 : index
    %c0_39 = arith.constant 0 : index
    %71 = vector.load %arg8[%c0_38, %c0_39] : memref<32x16xf32, #tpu.memory_space<vmem>>, vector<32x16xf32>
    %c0_40 = arith.constant 0 : index
    %c0_41 = arith.constant 0 : index
    %72 = vector.load %arg9[%c0_40, %c0_41] : memref<32x16xf32, #tpu.memory_space<vmem>>, vector<32x16xf32>
    %73 = arith.truncf %72 : vector<32x16xf32> to vector<32x16xbf16>
    %74 = arith.truncf %68 : vector<32x16xf32> to vector<32x16xbf16>
    %cst_42 = arith.constant dense<0.000000e+00> : vector<32x32xf32>
    %75 = tpu.matmul %74, %70, %cst_42 {dimension_numbers = #tpu.dot_dimension_numbers<[1], [0], [0], [1], [0, 0, 1, 1], [], []>} : vector<32x16xbf16>, vector<16x32xbf16>, vector<32x32xf32> -> vector<32x32xf32>
    %cst_43 = arith.constant 0.000000e+00 : f32
    %76 = vector.broadcast %cst_43 : f32 to vector<32x32xf32>
    %77 = arith.maximumf %75, %76 : vector<32x32xf32>
    %78 = vector.shape_cast %77 : vector<32x32xf32> to vector<4x8x32xf32>
    %cst_44 = arith.constant dense<0.000000e+00> : vector<4x32xf32>
    %79 = vector.multi_reduction <add>, %78, %cst_44 [1] : vector<4x8x32xf32> to vector<4x32xf32>
    %cst_45 = arith.constant 8.000000e+00 : f32
    %80 = vector.broadcast %cst_45 : f32 to vector<4x32xf32>
    %81 = arith.divf %79, %80 : vector<4x32xf32>
    %cst_46 = arith.constant dense<0.000000e+00> : vector<4x16xf32>
    %82 = tpu.matmul %81, %71, %cst_46 {dimension_numbers = #tpu.dot_dimension_numbers<[1], [0], [0], [1], [0, 0, 1, 1], [], []>} : vector<4x32xf32>, vector<32x16xf32>, vector<4x16xf32> -> vector<4x16xf32>
    %83 = arith.truncf %77 : vector<32x32xf32> to vector<32x32xbf16>
    %cst_47 = arith.constant dense<0.000000e+00> : vector<32x16xf32>
    %84 = tpu.matmul %83, %73, %cst_47 {dimension_numbers = #tpu.dot_dimension_numbers<[1], [0], [0], [1], [0, 0, 1, 1], [], []>} : vector<32x32xbf16>, vector<32x16xbf16>, vector<32x16xf32> -> vector<32x16xf32>
    %c0_48 = arith.constant 0 : index
    %c0_49 = arith.constant 0 : index
    %85 = vector.load %arg14[%c0_48, %c0_49] : memref<32x16xf32, #tpu.memory_space<vmem>>, vector<32x16xf32>
    tpu.vector_store %arg14[%c0_48, %c0_49], %84 {strides = array<i32>} : memref<32x16xf32, #tpu.memory_space<vmem>>, vector<32x16xf32>,
    %86 = vector.extract_strided_slice %84 {offsets = [0, 0], sizes = [16, 16], strides = [1, 1]} : vector<32x16xf32> to vector<16x16xf32>
    %87 = arith.subf %86, %65 : vector<16x16xf32>
    %88 = vector.extract_strided_slice %84 {offsets = [16, 0], sizes = [16, 16], strides = [1, 1]} : vector<32x16xf32> to vector<16x16xf32>
    %89 = arith.subf %88, %65 : vector<16x16xf32>
    %90 = arith.mulf %87, %87 : vector<16x16xf32>
    %91 = vector.shape_cast %90 : vector<16x16xf32> to vector<1x16x16xf32>
    %cst_50 = arith.constant dense<0.000000e+00> : vector<1xf32>
    %92 = vector.multi_reduction <add>, %91, %cst_50 [1, 2] : vector<1x16x16xf32> to vector<1xf32>
    %93 = vector.shape_cast %92 : vector<1xf32> to vector<1x1x1xf32>
    %94 = vector.extract %93[0, 0, 0] : f32 from vector<1x1x1xf32>
    %95 = arith.mulf %89, %89 : vector<16x16xf32>
    %96 = vector.shape_cast %95 : vector<16x16xf32> to vector<1x16x16xf32>
    %cst_51 = arith.constant dense<0.000000e+00> : vector<1xf32>
    %97 = vector.multi_reduction <add>, %96, %cst_51 [1, 2] : vector<1x16x16xf32> to vector<1xf32>
    %98 = vector.shape_cast %97 : vector<1xf32> to vector<1x1x1xf32>
    %99 = vector.extract %98[0, 0, 0] : f32 from vector<1x1x1xf32>
    %100 = arith.addf %94, %99 : f32
    %cst_52 = arith.constant 5.120000e+02 : f32
    %101 = arith.divf %100, %cst_52 : f32
    %c1 = arith.constant 1 : index
    %102 = memref.load %arg15[%c1] : memref<4xf32, #tpu.memory_space<smem>>
    memref.store %101, %arg15[%c1] : memref<4xf32, #tpu.memory_space<smem>>
    %103 = arith.truncf %84 : vector<32x16xf32> to vector<32x16xbf16>
    %cst_53 = arith.constant dense<0.000000e+00> : vector<32x32xf32>
    %104 = tpu.matmul %103, %70, %cst_53 {dimension_numbers = #tpu.dot_dimension_numbers<[1], [0], [0], [1], [0, 0, 1, 1], [], []>} : vector<32x16xbf16>, vector<16x32xbf16>, vector<32x32xf32> -> vector<32x32xf32>
    %cst_54 = arith.constant 0.000000e+00 : f32
    %105 = vector.broadcast %cst_54 : f32 to vector<32x32xf32>
    %106 = arith.maximumf %104, %105 : vector<32x32xf32>
    %107 = vector.shape_cast %106 : vector<32x32xf32> to vector<4x8x32xf32>
    %cst_55 = arith.constant dense<0.000000e+00> : vector<4x32xf32>
    %108 = vector.multi_reduction <add>, %107, %cst_55 [1] : vector<4x8x32xf32> to vector<4x32xf32>
    %cst_56 = arith.constant 8.000000e+00 : f32
    %109 = vector.broadcast %cst_56 : f32 to vector<4x32xf32>
    %110 = arith.divf %108, %109 : vector<4x32xf32>
    %cst_57 = arith.constant dense<0.000000e+00> : vector<4x16xf32>
    %111 = tpu.matmul %110, %71, %cst_57 {dimension_numbers = #tpu.dot_dimension_numbers<[1], [0], [0], [1], [0, 0, 1, 1], [], []>} : vector<4x32xf32>, vector<32x16xf32>, vector<4x16xf32> -> vector<4x16xf32>
    %112 = vector.extract_strided_slice %82 {offsets = [2, 0], sizes = [2, 16], strides = [1, 1]} : vector<4x16xf32> to vector<2x16xf32>
    %113 = vector.extract_strided_slice %111 {offsets = [0, 0], sizes = [2, 16], strides = [1, 1]} : vector<4x16xf32> to vector<2x16xf32>
    %114 = vector.extract_strided_slice %111 {offsets = [2, 0], sizes = [2, 16], strides = [1, 1]} : vector<4x16xf32> to vector<2x16xf32>
    %115 = vector.extract_strided_slice %112 {offsets = [0, 0], sizes = [1, 16], strides = [1, 1]} : vector<2x16xf32> to vector<1x16xf32>
    %c1_58 = arith.constant 1 : index
    %c0_59 = arith.constant 0 : index
    %116 = vector.load %arg16[%c1_58, %c0_59] : memref<2x96xf32, #tpu.memory_space<vmem>>, vector<1x16xf32>
    tpu.vector_store %arg16[%c1_58, %c0_59], %115 {strides = array<i32>} : memref<2x96xf32, #tpu.memory_space<vmem>>, vector<1x16xf32>,
    %117 = vector.extract_strided_slice %112 {offsets = [1, 0], sizes = [1, 16], strides = [1, 1]} : vector<2x16xf32> to vector<1x16xf32>
    %c1_60 = arith.constant 1 : index
    %c16_61 = arith.constant 16 : index
    %118 = vector.load %arg16[%c1_60, %c16_61] : memref<2x96xf32, #tpu.memory_space<vmem>>, vector<1x16xf32>
    tpu.vector_store %arg16[%c1_60, %c16_61], %117 {strides = array<i32>} : memref<2x96xf32, #tpu.memory_space<vmem>>, vector<1x16xf32>,
    %119 = vector.extract_strided_slice %113 {offsets = [0, 0], sizes = [1, 16], strides = [1, 1]} : vector<2x16xf32> to vector<1x16xf32>
    %c1_62 = arith.constant 1 : index
    %c32_63 = arith.constant 32 : index
    %120 = vector.load %arg16[%c1_62, %c32_63] : memref<2x96xf32, #tpu.memory_space<vmem>>, vector<1x16xf32>
    tpu.vector_store %arg16[%c1_62, %c32_63], %119 {strides = array<i32>} : memref<2x96xf32, #tpu.memory_space<vmem>>, vector<1x16xf32>,
    %121 = vector.extract_strided_slice %113 {offsets = [1, 0], sizes = [1, 16], strides = [1, 1]} : vector<2x16xf32> to vector<1x16xf32>
    %c1_64 = arith.constant 1 : index
    %c48_65 = arith.constant 48 : index
    %122 = vector.load %arg16[%c1_64, %c48_65] : memref<2x96xf32, #tpu.memory_space<vmem>>, vector<1x16xf32>
    tpu.vector_store %arg16[%c1_64, %c48_65], %121 {strides = array<i32>} : memref<2x96xf32, #tpu.memory_space<vmem>>, vector<1x16xf32>,
    %123 = vector.extract_strided_slice %114 {offsets = [0, 0], sizes = [1, 16], strides = [1, 1]} : vector<2x16xf32> to vector<1x16xf32>
    %c1_66 = arith.constant 1 : index
    %c64_67 = arith.constant 64 : index
    %124 = vector.load %arg16[%c1_66, %c64_67] : memref<2x96xf32, #tpu.memory_space<vmem>>, vector<1x16xf32>
    tpu.vector_store %arg16[%c1_66, %c64_67], %123 {strides = array<i32>} : memref<2x96xf32, #tpu.memory_space<vmem>>, vector<1x16xf32>,
    %125 = vector.extract_strided_slice %114 {offsets = [1, 0], sizes = [1, 16], strides = [1, 1]} : vector<2x16xf32> to vector<1x16xf32>
    %c1_68 = arith.constant 1 : index
    %c80_69 = arith.constant 80 : index
    %126 = vector.load %arg16[%c1_68, %c80_69] : memref<2x96xf32, #tpu.memory_space<vmem>>, vector<1x16xf32>
    tpu.vector_store %arg16[%c1_68, %c80_69], %125 {strides = array<i32>} : memref<2x96xf32, #tpu.memory_space<vmem>>, vector<1x16xf32>,
    %127 = vector.extract_strided_slice %82 {offsets = [0, 0], sizes = [2, 16], strides = [1, 1]} : vector<4x16xf32> to vector<2x16xf32>
    %c0_70 = arith.constant 0 : index
    %c0_71 = arith.constant 0 : index
    %128 = vector.load %arg16[%c0_70, %c0_71] : memref<2x96xf32, #tpu.memory_space<vmem>>, vector<2x96xf32>
    %c0_72 = arith.constant 0 : index
    %c0_73 = arith.constant 0 : index
    %129 = vector.load %arg11[%c0_72, %c0_73] : memref<16x96xf32, #tpu.memory_space<vmem>>, vector<16x96xf32>
    %c0_74 = arith.constant 0 : index
    %c0_75 = arith.constant 0 : index
    %130 = vector.load %arg12[%c0_74, %c0_75] : memref<96x6xf32, #tpu.memory_space<vmem>>, vector<96x6xf32>
    %c0_76 = arith.constant 0 : index
    %c0_77 = arith.constant 0 : index
    %131 = vector.load %arg10[%c0_76, %c0_77] : memref<32x16xf32, #tpu.memory_space<vmem>>, vector<32x16xf32>
    %cst_78 = arith.constant dense<0.000000e+00> : vector<2x96xf32>
    %132 = tpu.matmul %64, %129, %cst_78 {dimension_numbers = #tpu.dot_dimension_numbers<[1], [0], [0], [1], [0, 0, 1, 1], [], []>} : vector<2x16xf32>, vector<16x96xf32>, vector<2x96xf32> -> vector<2x96xf32>
    %133 = arith.mulf %128, %132 : vector<2x96xf32>
    %cst_79 = arith.constant dense<0.000000e+00> : vector<2x6xf32>
    %134 = tpu.matmul %133, %130, %cst_79 {dimension_numbers = #tpu.dot_dimension_numbers<[1], [0], [0], [1], [0, 0, 1, 1], [], []>} : vector<2x96xf32>, vector<96x6xf32>, vector<2x6xf32> -> vector<2x6xf32>
    %cst_80 = arith.constant 14.2857141 : f32
    %135 = vector.broadcast %cst_80 : f32 to vector<2x6xf32>
    %136 = arith.mulf %134, %135 : vector<2x6xf32>
    %cst_81 = arith.constant dense<0.000000e+00> : vector<2x32xf32>
    %137 = tpu.matmul %64, %131, %cst_81 {dimension_numbers = #tpu.dot_dimension_numbers<[1], [1], [0], [0], [0, 0, 1, 0], [], []>} : vector<2x16xf32>, vector<32x16xf32>, vector<2x32xf32> -> vector<2x32xf32>
    %cst_82 = arith.constant 14.2857141 : f32
    %138 = vector.broadcast %cst_82 : f32 to vector<2x32xf32>
    %139 = arith.mulf %137, %138 : vector<2x32xf32>
    %cst_83 = arith.constant dense<0xFF800000> : vector<2xf32>
    %140 = vector.multi_reduction <maximumf>, %136, %cst_83 [1] : vector<2x6xf32> to vector<2xf32>
    %141 = vector.shape_cast %140 : vector<2xf32> to vector<2x1xf32>
    %cst_84 = arith.constant dense<0xFF800000> : vector<2xf32>
    %142 = vector.multi_reduction <maximumf>, %139, %cst_84 [1] : vector<2x32xf32> to vector<2xf32>
    %143 = vector.shape_cast %142 : vector<2xf32> to vector<2x1xf32>
    %144 = arith.maximumf %141, %143 : vector<2x1xf32>
    %145 = vector.broadcast %144 : vector<2x1xf32> to vector<2x6xf32>
    %146 = arith.subf %136, %145 : vector<2x6xf32>
    %147 = math.exp %146 : vector<2x6xf32>
    %cst_85 = arith.constant dense<0.000000e+00> : vector<2xf32>
    %148 = vector.multi_reduction <add>, %147, %cst_85 [1] : vector<2x6xf32> to vector<2xf32>
    %149 = vector.shape_cast %148 : vector<2xf32> to vector<2x1xf32>
    %150 = vector.broadcast %144 : vector<2x1xf32> to vector<2x32xf32>
    %151 = arith.subf %139, %150 : vector<2x32xf32>
    %152 = math.exp %151 : vector<2x32xf32>
    %cst_86 = arith.constant dense<0.000000e+00> : vector<2xf32>
    %153 = vector.multi_reduction <add>, %152, %cst_86 [1] : vector<2x32xf32> to vector<2xf32>
    %154 = vector.shape_cast %153 : vector<2xf32> to vector<2x1xf32>
    %155 = arith.addf %149, %154 : vector<2x1xf32>
    %156 = math.log %155 : vector<2x1xf32>
    %157 = arith.addf %144, %156 : vector<2x1xf32>
    %158 = vector.extract_strided_slice %136 {offsets = [0, 0], sizes = [2, 1], strides = [1, 1]} : vector<2x6xf32> to vector<2x1xf32>
    %159 = arith.subf %157, %158 : vector<2x1xf32>
    %160 = vector.shape_cast %159 : vector<2x1xf32> to vector<1x2x1xf32>
    %cst_87 = arith.constant dense<0.000000e+00> : vector<1xf32>
    %161 = vector.multi_reduction <add>, %160, %cst_87 [1, 2] : vector<1x2x1xf32> to vector<1xf32>
    %162 = vector.shape_cast %161 : vector<1xf32> to vector<1x1x1xf32>
    %163 = vector.extract %162[0, 0, 0] : f32 from vector<1x1x1xf32>
    %cst_88 = arith.constant 2.000000e+00 : f32
    %164 = arith.divf %163, %cst_88 : f32
    %c2 = arith.constant 2 : index
    %165 = memref.load %arg15[%c2] : memref<4xf32, #tpu.memory_space<smem>>
    memref.store %164, %arg15[%c2] : memref<4xf32, #tpu.memory_space<smem>>
    %cst_89 = arith.constant dense<0.000000e+00> : vector<2x96xf32>
    %166 = tpu.matmul %127, %129, %cst_89 {dimension_numbers = #tpu.dot_dimension_numbers<[1], [0], [0], [1], [0, 0, 1, 1], [], []>} : vector<2x16xf32>, vector<16x96xf32>, vector<2x96xf32> -> vector<2x96xf32>
    %167 = arith.mulf %128, %166 : vector<2x96xf32>
    %cst_90 = arith.constant dense<0.000000e+00> : vector<2x6xf32>
    %168 = tpu.matmul %167, %130, %cst_90 {dimension_numbers = #tpu.dot_dimension_numbers<[1], [0], [0], [1], [0, 0, 1, 1], [], []>} : vector<2x96xf32>, vector<96x6xf32>, vector<2x6xf32> -> vector<2x6xf32>
    %cst_91 = arith.constant 14.2857141 : f32
    %169 = vector.broadcast %cst_91 : f32 to vector<2x6xf32>
    %170 = arith.mulf %168, %169 : vector<2x6xf32>
    %cst_92 = arith.constant dense<0.000000e+00> : vector<2x32xf32>
    %171 = tpu.matmul %127, %131, %cst_92 {dimension_numbers = #tpu.dot_dimension_numbers<[1], [1], [0], [0], [0, 0, 1, 0], [], []>} : vector<2x16xf32>, vector<32x16xf32>, vector<2x32xf32> -> vector<2x32xf32>
    %cst_93 = arith.constant 14.2857141 : f32
    %172 = vector.broadcast %cst_93 : f32 to vector<2x32xf32>
    %173 = arith.mulf %171, %172 : vector<2x32xf32>
    %cst_94 = arith.constant dense<0xFF800000> : vector<2xf32>
    %174 = vector.multi_reduction <maximumf>, %170, %cst_94 [1] : vector<2x6xf32> to vector<2xf32>
    %175 = vector.shape_cast %174 : vector<2xf32> to vector<2x1xf32>
    %cst_95 = arith.constant dense<0xFF800000> : vector<2xf32>
    %176 = vector.multi_reduction <maximumf>, %173, %cst_95 [1] : vector<2x32xf32> to vector<2xf32>
    %177 = vector.shape_cast %176 : vector<2xf32> to vector<2x1xf32>
    %178 = arith.maximumf %175, %177 : vector<2x1xf32>
    %179 = vector.broadcast %178 : vector<2x1xf32> to vector<2x6xf32>
    %180 = arith.subf %170, %179 : vector<2x6xf32>
    %181 = math.exp %180 : vector<2x6xf32>
    %cst_96 = arith.constant dense<0.000000e+00> : vector<2xf32>
    %182 = vector.multi_reduction <add>, %181, %cst_96 [1] : vector<2x6xf32> to vector<2xf32>
    %183 = vector.shape_cast %182 : vector<2xf32> to vector<2x1xf32>
    %184 = vector.broadcast %178 : vector<2x1xf32> to vector<2x32xf32>
    %185 = arith.subf %173, %184 : vector<2x32xf32>
    %186 = math.exp %185 : vector<2x32xf32>
    %cst_97 = arith.constant dense<0.000000e+00> : vector<2xf32>
    %187 = vector.multi_reduction <add>, %186, %cst_97 [1] : vector<2x32xf32> to vector<2xf32>
    %188 = vector.shape_cast %187 : vector<2xf32> to vector<2x1xf32>
    %189 = arith.addf %183, %188 : vector<2x1xf32>
    %190 = math.log %189 : vector<2x1xf32>
    %191 = arith.addf %178, %190 : vector<2x1xf32>
    %192 = vector.extract_strided_slice %170 {offsets = [0, 0], sizes = [2, 1], strides = [1, 1]} : vector<2x6xf32> to vector<2x1xf32>
    %193 = arith.subf %191, %192 : vector<2x1xf32>
    %194 = vector.shape_cast %193 : vector<2x1xf32> to vector<1x2x1xf32>
    %cst_98 = arith.constant dense<0.000000e+00> : vector<1xf32>
    %195 = vector.multi_reduction <add>, %194, %cst_98 [1, 2] : vector<1x2x1xf32> to vector<1xf32>
    %196 = vector.shape_cast %195 : vector<1xf32> to vector<1x1x1xf32>
    %197 = vector.extract %196[0, 0, 0] : f32 from vector<1x1x1xf32>
    %cst_99 = arith.constant 2.000000e+00 : f32
    %198 = arith.divf %197, %cst_99 : f32
    %c3 = arith.constant 3 : index
    %199 = memref.load %arg15[%c3] : memref<4xf32, #tpu.memory_space<smem>>
    memref.store %198, %arg15[%c3] : memref<4xf32, #tpu.memory_space<smem>>
    return
  }
}

</mosaic_0001>

<bundles_post_ra>
// kernel: moco_forward.1
= control target key start
LH: loop header
LB: loop body
LE: loop exit
PB: predicated region body
PF: predicated region fallthrough
CT: control target
= control target key end

     0   :  { %21 = vsyncpa [#allocation4], 0  ;;  %s1643_s0 = inlined_call_operand.vmem [shape: f32[16,16], index: 0, kind: input, shape index: {}]   ;;  %s1644_s1 = inlined_call_operand.vmem [shape: f32[16,16], index: 1, kind: input, shape index: {}]   ;;  %s1645_s2 = inlined_call_operand.vmem [shape: f32[16,16], index: 2, kind: input, shape index: {}]   ;;  %s1646_s3 = inlined_call_operand.vmem [shape: f32[16,16], index: 3, kind: input, shape index: {}]   ;;  %s1647_s4 = inlined_call_operand.vmem [shape: f32[16,32], index: 4, kind: input, shape index: {}]   ;;  %s1648_s5 = inlined_call_operand.vmem [shape: f32[32,16], index: 5, kind: input, shape index: {}]   ;;  %s1649_s6 = inlined_call_operand.vmem [shape: f32[32,16], index: 6, kind: input, shape index: {}]   ;;  %s1650_s7 = inlined_call_operand.vmem [shape: f32[16,32], index: 7, kind: input, shape index: {}]   ;;  %s1651_s8 = inlined_call_operand.vmem [shape: f32[32,16], index: 8, kind: input, shape index: {}]   ;;  %s1652_s9 = inlined_call_operand.vmem [shape: f32[32,16], index: 9, kind: input, shape index: {}]   ;;  %s1653_s10 = inlined_call_operand.vmem [shape: f32[32,16], index: 10, kind: input, shape index: {}]   ;;  %s1654_s11 = inlined_call_operand.vmem [shape: f32[16,96], index: 11, kind: input, shape index: {}]   ;;  %s1655_s12 = inlined_call_operand.hbm [shape: f32[96,6], index: 12, kind: input, shape index: {}]   ;;  %s1656_s13 = inlined_call_operand.hbm [shape: f32[32,16], index: 13, kind: output, shape index: {0}]   ;;  %s1657_s14 = inlined_call_operand.hbm [shape: f32[32,16], index: 14, kind: output, shape index: {1}]   ;;  %s1658_s15 = inlined_call_operand.vmem [shape: f32[4], index: 15, kind: output, shape index: {2}]  }
   0x1   :  { %22 = vsyncpa [#allocation5], 0 }
   0x2   :  { %23 = vsyncpa [#allocation9], 0 }
   0x3   :  { %24 = vsyncpa [#allocation6], 0  ;;  %s53_s20 = sshll.u32 %s1655_s12, 4  ;;  %s1174_s21 = smov [#allocation3]   ;;  %s54_s20 = int_to_ptr.hbm [resolvable:$true] %s53_s20 }
   0x4   :  { %s55_s22 = sshll.u32 %s1174_s21, 4  ;;  %s1175_s23 = smov 128   ;;  %s56_s22 = int_to_ptr.vmem [resolvable:$true] %s55_s22 }
   0x5   :  { %s1176_s24 = smov 8  }
   0x6   :  { %61 = dma.hbm_to_vmem [thread:$0]  %s54_s20, 1536, %s56_s22, [#allocation4], %s1175_s23, %s1175_s23, %s1176_s24  }
   0x7   :  { %1166 = dma.done.wait [#allocation4], 1536  }
   0x8   :  { %1167 = vsyncadd [#allocation4], 4294965760  ;;  %v77_v0 = vld [vmem:[%s1647_s4] sm:$0xff]  ;;  %v78_v1 = vld [vmem:[%s1647_s4 + $0x8] sm:$0xff]  ;;  %vm92_vm0 = vcmask 130048   ;;  %vm122_vm1 = vcmask 261120  }
   0x9   :  { %v67_v2 = vld [vmem:[%s1645_s2] sm:$0xff]  ;;  %v79_v3 = vpack.c.bf16 %v78_v1, %v77_v0  ;;  %v68_v4 = vld [vmem:[%s1645_s2 + $0x8] sm:$0xff]  ;;  %v86_v20 = vld [vmem:[%s1649_s6 + $0x10] sm:$0xff]  ;;  %v1177_v34 = vmov 8.0   ;;  %vm166_vm3 = vcmask 1041409   ;;  %vm168_vm4 = vcmask 1042434  }
   0xa   :  { %v1289_v5 = vld [vmem:[%s1643_s0] sm:$0xff]  ;;  %v1294_v6 = vld [vmem:[%s1643_s0 + $0x8] sm:$0xff]  ;;  %v87_v21 = vld [vmem:[%s1649_s6 + $0x18] sm:$0xff]  ;;  %1064 = vrcp.f32 %v1177_v34  ;;  %vm170_vm5 = vcmask 1043459   ;;  %vm361_vm6 = vcmask 124930   ;;  %vm367_vm7 = vcmask 257155  }
   0xb   :  { %v73_v7 = vadd.f32 %v1289_v5, %v67_v2  ;;  %v74_v8 = vadd.f32 %v1294_v6, %v68_v4  ;;  %v1301_v9 = vld [vmem:[%s1644_s1] sm:$0xff]  ;;  %v1306_v10 = vld [vmem:[%s1644_s1 + $0x8] sm:$0xff]  ;;  %106 = vmatpush.bf16.msra.mxu0 %v79_v3  ;;  %284 = vmatpush.bf16.msra.mxu3 %v79_v3  ;;  %v89_v22 = vpack.c.bf16 %v87_v21, %v86_v20  ;;  %v83_v27 = vld [vmem:[%s1648_s5 + $0x18] sm:$0xff]  ;;  %s1179_s17 = smov 64   ;;  %s1180_s18 = smov 48   ;;  %vm373_vm8 = vcmask 385280  }
   0xc   :  { %v1309_v11 = vadd.f32 %v1301_v9, %v67_v2  ;;  %v1312_v12 = vadd.f32 %v1306_v10, %v68_v4  ;;  %v1320_v15 = vld [vmem:[%s1646_s3] sm:$0xff]  ;;  %v1325_v16 = vld [vmem:[%s1646_s3 + $0x8] sm:$0xff]  ;;  %186 = vmatpush.msra.mxu1 %v83_v27  ;;  %v82_v28 = vld [vmem:[%s1648_s5 + $0x10] sm:$0xff]  ;;  %s1181_s19 = smov 32   ;;  %vm378_vm9 = vcmask 517505   ;;  %vm383_vm10 = vcmask 649730  }
   0xd   :  { %v90_v13 = vpack.c.bf16 %v74_v8, %v73_v7  ;;  %v75_v17 = vadd.f32 %v1289_v5, %v1320_v15  ;;  %v76_v18 = vadd.f32 %v1294_v6, %v1325_v16  ;;  %208 = vmatpush.bf16.msra.mxu2 %v89_v22  ;;  %v84_v23 = vld [vmem:[%s1649_s6] sm:$0xff]  ;;  %v85_v24 = vld [vmem:[%s1649_s6 + $0x8] sm:$0xff]  ;;  %vm795_vm11 = vcmask 254976   ;;  %s1185_s20 = smov [#allocation7]   ;;  %s958_s0 = sshll.u32 %s1656_s13, 4  ;;  %s959_s0 = int_to_ptr.hbm [resolvable:$true] %s958_s0 }
   0xe   :  { %v409_v14 = vpack.c.bf16 %v1312_v12, %v1309_v11  ;;  %v88_v25 = vpack.c.bf16 %v85_v24, %v84_v23  ;;  %187 = vmatpush.msra.mxu1 %v82_v28  ;;  %v81_v29 = vld [vmem:[%s1648_s5 + $0x8] sm:$0xff]  ;;  %v80_v31 = vld [vmem:[%s1648_s5] sm:$0xff]  ;;  %s1178_s5 = smov 16   ;;  %vm388_vm12 = vcmask 781955   ;;  %vm733_vm13 = vcmask 785408   ;;  %s956_s4 = sshll.u32 %s1185_s20, 4  ;;  %s957_s4 = int_to_ptr.vmem [resolvable:$true] %s956_s4 }
   0xf   :  { %1004 = vmatmul.msk.bf16.vlgmr.msra.gmra.mxu0 %vm92_vm0, %v90_v13  ;;  %v91_v19 = vpack.c.bf16 %v76_v18, %v75_v17  ;;  %vm791_vm14 = vcmask 41984   ;;  %vm817_vm15 = vcmask 1024  }
  0x10   :  { %188 = vmatpush.msra.mxu1 %v81_v29  ;;  %v1065_v40 = vpop.eup %1064 }
  0x11   :  { %209 = vmatpush.bf16.msra.mxu2 %v88_v25  ;;  %v152_v45 = vmul.f32 8.0, %v1065_v40  ;;  %vm156_vm2 = vweird.f32 %v1065_v40 }
  0x12   :  { %189 = vmatpush.msra.mxu1 %v80_v31 }
  0x13   :  { %v153_v51 = vsub.f32 1.0, %v152_v45 }
  0x14   :  { %353 = vmatpush.msrb.mxu1 %v83_v27 }
  0x15   :  { %v154_v58 = vmul.f32 %v1065_v40, %v153_v51 }
  0x16   :  { %354 = vmatpush.msrb.mxu1 %v82_v28 }
  0x17   :  { %v155_v2 = vadd.f32 %v1065_v40, %v154_v58 }
  0x18   :  { %355 = vmatpush.msrb.mxu1 %v81_v29 }
  0x19   :  { %v1362_v17 = vsel %vm156_vm2, %v1065_v40, %v155_v2 }
  0x1a   :  { %356 = vmatpush.msrb.mxu1 %v80_v31 }
  0x1f   :  { %1005 = vmatmul.msk.bf16.gmra.mxu0 %vm92_vm0, %v91_v19 }
  0x8c   :  { %v108_v26 = vpop.f32.mrf.mxu0 }
  0x8d   :  { %v118_v30 = vmax.f32 %v108_v26, 0.0 }
  0x8f   :  { %v123_v35 = vsel %vm122_vm1, %v118_v30, 0.0 }
  0x90   :  { %v124_v39 = vrot.slane %v123_v35, 4 }
  0x92   :  { %v125_v44 = vadd.f32 %v124_v39, %v123_v35 }
  0x94   :  { %v110_v32 = vpop.f32.mrf.mxu0  ;;  %v126_v49 = vrot.slane %v125_v44, 2 }
  0x95   :  { %v119_v33 = vmax.f32 %v110_v32, 0.0 }
  0x96   :  { %v127_v56 = vadd.f32 %v126_v49, %v125_v44  ;;  %v397_v49 = vld [vmem:[%s1650_s7 + $0x8] sm:$0xff] }
  0x97   :  { %v130_v36 = vsel %vm122_vm1, %v119_v33, 0.0  ;;  %v194_v37 = vpack.c.bf16 %v119_v33, %v118_v30 }
  0x98   :  { %v131_v38 = vrot.slane %v130_v36, 4  ;;  %v128_v0 = vrot.slane %v127_v56, 1 }
  0x99   :  { %1007 = vmatmul.msk.bf16.vlgmr.msra.gmra.mxu2 %vm122_vm1, %v194_v37 }
  0x9a   :  { %v132_v41 = vadd.f32 %v131_v38, %v130_v36  ;;  %v129_v8 = vadd.f32 %v128_v0, %v127_v56 }
  0x9c   :  { %v113_v42 = vpop.f32.mrf.mxu0  ;;  %v133_v47 = vrot.slane %v132_v41, 2  ;;  %v158_v21 = vmul.f32 %v1362_v17, %v129_v8 }
  0x9d   :  { %v120_v43 = vmax.f32 %v113_v42, 0.0 }
  0x9e   :  { %v134_v52 = vadd.f32 %v133_v47, %v132_v41 }
  0x9f   :  { %v137_v46 = vsel %vm122_vm1, %v120_v43, 0.0 }
  0xa0   :  { %v138_v48 = vrot.slane %v137_v46, 4  ;;  %v135_v61 = vrot.slane %v134_v52, 1 }
  0xa2   :  { %v139_v50 = vadd.f32 %v138_v48, %v137_v46  ;;  %v136_v3 = vadd.f32 %v135_v61, %v134_v52  ;;  %v396_v48 = vld [vmem:[%s1650_s7] sm:$0xff]  ;;  %s1186_s7 = smov [#allocation8]  }
  0xa3   :  { %v398_v51 = vpack.c.bf16 %v397_v49, %v396_v48  ;;  %v399_v49 = vld [vmem:[%s1651_s8] sm:$0xff]  ;;  %s969_s27 = sshll.u32 %s1186_s7, 4  ;;  %s970_s27 = int_to_ptr.vmem [resolvable:$true] %s969_s27 }
  0xa4   :  { %v140_v53 = vrot.slane %v139_v50, 2  ;;  %v115_v54 = vpop.f32.mrf.mxu0  ;;  %v159_v18 = vmul.f32 %v1362_v17, %v136_v3 }
  0xa5   :  { %v121_v55 = vmax.f32 %v115_v54, 0.0  ;;  %591 = vmatpush.bf16.msrb.mxu2 %v398_v51 }
  0xa6   :  { %v141_v57 = vadd.f32 %v140_v53, %v139_v50  ;;  %v167_v24 = vsel %vm166_vm3, %v159_v18, %v158_v21 }
  0xa7   :  { %v144_v59 = vsel %vm122_vm1, %v121_v55, 0.0  ;;  %v195_v60 = vpack.c.bf16 %v121_v55, %v120_v43 }
  0xa8   :  { %v145_v62 = vrot.slane %v144_v59, 4  ;;  %v142_v63 = vrot.slane %v141_v57, 1 }
  0xa9   :  { %1008 = vmatmul.msk.bf16.gmra.mxu2 %vm122_vm1, %v195_v60 }
  0xaa   :  { %v146_v1 = vadd.f32 %v145_v62, %v144_v59  ;;  %v143_v7 = vadd.f32 %v142_v63, %v141_v57 }
  0xac   :  { %v147_v4 = vrot.slane %v146_v1, 2  ;;  %v160_v20 = vmul.f32 %v1362_v17, %v143_v7 }
  0xae   :  { %v148_v13 = vadd.f32 %v147_v4, %v146_v1  ;;  %v169_v25 = vsel %vm168_vm4, %v160_v20, %v167_v24 }
  0xb0   :  { %v149_v19 = vrot.slane %v148_v13, 1 }
  0xb2   :  { %v150_v22 = vadd.f32 %v149_v19, %v148_v13 }
  0xb4   :  { %v161_v23 = vmul.f32 %v1362_v17, %v150_v22 }
  0xb6   :  { %v171_v26 = vsel %vm170_vm5, %v161_v23, %v169_v25  ;;  %v405_v25 = vld [vmem:[%s1652_s9 + $0x10] sm:$0xff] }
  0xb7   :  { %1006 = vmatmul.msk.f32.vlgmr.msra.gmra.mxu1 %vm122_vm1, %v171_v26  ;;  %v406_v26 = vld [vmem:[%s1652_s9 + $0x18] sm:$0xff] }
  0xb8   :  { %424 = vmatpush.bf16.msra.mxu1 %v398_v51 }
 0x11c   :  { %v211_v27 = vpop.f32.mrf.mxu2 }
 0x11d   :  { %221 = vst.msk [vmem:[#allocation7] sm:$0xff] %vm92_vm0, %v211_v27  ;;  %v225_v28 = vsub.f32 %v211_v27, %v1289_v5 }
 0x11f   :  { %v229_v30 = vmul.f32 %v225_v28, %v225_v28 }
 0x121   :  { %v231_v34 = vsel %vm92_vm0, %v229_v30, 0.0 }
 0x124   :  { %v213_v29 = vpop.f32.mrf.mxu2 }
 0x125   :  { %222 = vst.msk [vmem:[#allocation7 + $0x8] sm:$0xff] %vm92_vm0, %v213_v29  ;;  %v226_v31 = vsub.f32 %v213_v29, %v1294_v6  ;;  %v269_v32 = vpack.c.bf16 %v213_v29, %v211_v27  ;;  %v408_v29 = vpack.c.bf16 %v406_v26, %v405_v25 }
 0x127   :  { %v230_v33 = vmul.f32 %v226_v31, %v226_v31  ;;  %1009 = vmatmul.msk.bf16.vlgmr.msra.gmra.mxu3 %vm92_vm0, %v269_v32 }
 0x128   :  { %515 = vmatpush.bf16.msrb.mxu3 %v408_v29 }
 0x129   :  { %v232_v35 = vsel %vm92_vm0, %v230_v33, 0.0 }
 0x12a   :  { %v1379_v36 = vadd.f32 %v232_v35, %v231_v34 }
 0x12c   :  { %v1381_v37 = vpop.f32.mrf.mxu2 }
 0x12d   :  { %223 = vst.msk [vmem:[#allocation7 + $0x10] sm:$0xff] %vm92_vm0, %v1381_v37 }
 0x134   :  { %v1385_v38 = vpop.f32.mrf.mxu1  ;;  %v1387_v39 = vpop.f32.mrf.mxu2 }
 0x135   :  { %362 = vst.msk [vmem:[#allocation2 - $0x2] sm:$0x4] %vm361_vm6, %v1385_v38  ;;  %v270_v40 = vpack.c.bf16 %v1387_v39, %v1381_v37  ;;  %364 = vrot.lane.b32.xlu0 %v1385_v38, %s1178_s5 }
 0x136   :  { %224 = vst.msk [vmem:[#allocation7 + $0x18] sm:$0xff] %vm92_vm0, %v1387_v39 }
 0x137   :  { %1010 = vmatmul.msk.bf16.gmra.mxu3 %vm92_vm0, %v270_v40  ;;  %964 = dma.vmem_to_hbm [thread:$0]  %s957_s4, 512, %s959_s0, [#allocation5], %s1175_s23, %s1175_s23, %s1176_s24  }
 0x1a7   :  { %v365_v41 = vpop.permute.xlu0 %364 }
 0x1a8   :  { %368 = vst.msk [vmem:[#allocation2 - $0x3] sm:$0x8] %vm367_vm7, %v365_v41  ;;  %v394_v41 = vadd.f32 %v1301_v9, %v1320_v15  ;;  %v402_v15 = vld [vmem:[%s1651_s8 + $0x18] sm:$0xff] }
 0x1a9   :  { %493 = vmatpush.msrb.mxu0 %v402_v15 }
 0x1aa   :  { %v286_v42 = vpop.f32.mrf.mxu3 }
 0x1ab   :  { %v296_v43 = vmax.f32 %v286_v42, 0.0  ;;  %v395_v42 = vadd.f32 %v1306_v10, %v1325_v16  ;;  %v401_v16 = vld [vmem:[%s1651_s8 + $0x10] sm:$0xff] }
 0x1ac   :  { %494 = vmatpush.msrb.mxu0 %v401_v16 }
 0x1ad   :  { %v300_v46 = vsel %vm122_vm1, %v296_v43, 0.0  ;;  %v410_v43 = vpack.c.bf16 %v395_v42, %v394_v41 }
 0x1ae   :  { %v301_v52 = vrot.slane %v300_v46, 4 }
 0x1b0   :  { %v302_v56 = vadd.f32 %v301_v52, %v300_v46  ;;  %v400_v46 = vld [vmem:[%s1651_s8 + $0x8] sm:$0xff] }
 0x1b1   :  { %495 = vmatpush.msrb.mxu0 %v400_v46 }
 0x1b2   :  { %v288_v44 = vpop.f32.mrf.mxu3  ;;  %v303_v60 = vrot.slane %v302_v56, 2 }
 0x1b3   :  { %v297_v45 = vmax.f32 %v288_v44, 0.0  ;;  %v403_v44 = vld [vmem:[%s1652_s9] sm:$0xff]  ;;  %496 = vmatpush.msrb.mxu0 %v399_v49 }
 0x1b4   :  { %v304_v2 = vadd.f32 %v303_v60, %v302_v56 }
 0x1b5   :  { %v307_v47 = vsel %vm122_vm1, %v297_v45, 0.0  ;;  %v404_v45 = vld [vmem:[%s1652_s9 + $0x8] sm:$0xff]  ;;  %660 = vmatpush.msra.mxu0 %v402_v15 }
 0x1b6   :  { %v308_v50 = vrot.slane %v307_v47, 4  ;;  %v305_v18 = vrot.slane %v304_v2, 1  ;;  %v407_v11 = vpack.c.bf16 %v404_v45, %v403_v44  ;;  %v1478_v45 = vld [vmem:[%s1653_s10 + $0x18] sm:$0xff]  ;;  %v1493_v15 = vld [vmem:[%s1653_s10 + $0x8] sm:$0xff] }
 0x1b7   :  { %661 = vmatpush.msra.mxu0 %v401_v16  ;;  %1029 = vmatpush.xpose.msk.msra.mxu2 %vm92_vm0, %v1478_v45 }
 0x1b8   :  { %v309_v53 = vadd.f32 %v308_v50, %v307_v47  ;;  %v306_v23 = vadd.f32 %v305_v18, %v304_v2  ;;  %516 = vmatpush.bf16.msrb.mxu3 %v407_v11  ;;  %v1485_v11 = vld [vmem:[%s1653_s10 + $0x10] sm:$0xff] }
 0x1b9   :  { %662 = vmatpush.msra.mxu0 %v400_v46  ;;  %v1501_v46 = vld [vmem:[%s1653_s10] sm:$0xff]  ;;  %s971_s10 = sshll.u32 %s1657_s14, 4  ;;  %s972_s10 = int_to_ptr.hbm [resolvable:$true] %s971_s10 }
 0x1ba   :  { %v291_v54 = vpop.f32.mrf.mxu3  ;;  %v310_v58 = vrot.slane %v309_v53, 2  ;;  %v328_v31 = vmul.f32 %v306_v23, %v1362_v17 }
 0x1bb   :  { %v298_v55 = vmax.f32 %v291_v54, 0.0  ;;  %663 = vmatpush.msra.mxu0 %v399_v49  ;;  %1030 = vmatpush.xpose.msk.msra.mxu2 %vm92_vm0, %v1485_v11 }
 0x1bc   :  { %v311_v62 = vadd.f32 %v310_v58, %v309_v53 }
 0x1bd   :  { %v314_v57 = vsel %vm122_vm1, %v298_v55, 0.0 }
 0x1be   :  { %v315_v59 = vrot.slane %v314_v57, 4  ;;  %v312_v7 = vrot.slane %v311_v62, 1 }
 0x1bf   :  { %1031 = vmatpush.xpose.msk.msra.mxu2 %vm92_vm0, %v1493_v15 }
 0x1c0   :  { %v316_v61 = vadd.f32 %v315_v59, %v314_v57  ;;  %v313_v20 = vadd.f32 %v312_v7, %v311_v62 }
 0x1c2   :  { %v317_v63 = vrot.slane %v316_v61, 2  ;;  %v293_v0 = vpop.f32.mrf.mxu3  ;;  %v329_v27 = vmul.f32 %v313_v20, %v1362_v17 }
 0x1c3   :  { %v299_v1 = vmax.f32 %v293_v0, 0.0  ;;  %1032 = vmatpush.xpose.msk.msra.mxu2 %vm92_vm0, %v1501_v46 }
 0x1c4   :  { %v318_v3 = vadd.f32 %v317_v63, %v316_v61  ;;  %v336_v34 = vsel %vm166_vm3, %v329_v27, %v328_v31 }
 0x1c5   :  { %v321_v4 = vsel %vm122_vm1, %v299_v1, 0.0 }
 0x1c6   :  { %v322_v8 = vrot.slane %v321_v4, 4  ;;  %v319_v13 = vrot.slane %v318_v3, 1 }
 0x1c8   :  { %v323_v19 = vadd.f32 %v322_v8, %v321_v4  ;;  %v320_v22 = vadd.f32 %v319_v13, %v318_v3 }
 0x1ca   :  { %v324_v21 = vrot.slane %v323_v19, 2  ;;  %v330_v30 = vmul.f32 %v320_v22, %v1362_v17 }
 0x1cc   :  { %v325_v24 = vadd.f32 %v324_v21, %v323_v19  ;;  %v337_v35 = vsel %vm168_vm4, %v330_v30, %v336_v34 }
 0x1ce   :  { %v326_v28 = vrot.slane %v325_v24, 1 }
 0x1d0   :  { %v327_v32 = vadd.f32 %v326_v28, %v325_v24 }
 0x1d2   :  { %v331_v33 = vmul.f32 %v327_v32, %v1362_v17 }
 0x1d4   :  { %v338_v40 = vsel %vm170_vm5, %v331_v33, %v337_v35 }
 0x1d5   :  { %1011 = vmatmul.msk.f32.vlgmr.msrb.gmra.mxu1 %vm122_vm1, %v338_v40 }
 0x1dd   :  { %1012 = vmatmul.msk.bf16.vlgmr.msra.gmra.mxu1 %vm92_vm0, %v409_v14 }
 0x1ed   :  { %1013 = vmatmul.msk.bf16.gmra.mxu1 %vm92_vm0, %v410_v43 }
 0x252   :  { %v1438_v12 = vpop.f32.mrf.mxu1 }
 0x253   :  { %380 = vrot.lane.b32.xlu0 %v1438_v12, %s1179_s17  ;;  %375 = vrot.lane.b32.xlu2 %v1438_v12, %s1180_s18 }
 0x254   :  { %370 = vrot.lane.b32.xlu1 %v1438_v12, %s1181_s19 }
 0x25a   :  { %v426_v14 = vpop.f32.mrf.mxu1 }
 0x25b   :  { %v436_v47 = vmax.f32 %v426_v14, 0.0 }
 0x25d   :  { %v440_v51 = vsel %vm122_vm1, %v436_v47, 0.0 }
 0x25e   :  { %v441_v55 = vrot.slane %v440_v51, 4 }
 0x260   :  { %v442_v59 = vadd.f32 %v441_v55, %v440_v51 }
 0x262   :  { %v428_v48 = vpop.f32.mrf.mxu1  ;;  %v443_v63 = vrot.slane %v442_v59, 2 }
 0x263   :  { %v437_v50 = vmax.f32 %v428_v48, 0.0 }
 0x264   :  { %v444_v7 = vadd.f32 %v443_v63, %v442_v59  ;;  %v1535_v63 = vld [vmem:[%s1654_s11 + $0x8] sm:$0xff] }
 0x265   :  { %v447_v52 = vsel %vm122_vm1, %v437_v50, 0.0  ;;  %v501_v53 = vpack.c.bf16 %v437_v50, %v436_v47 }
 0x266   :  { %v448_v54 = vrot.slane %v447_v52, 4  ;;  %v445_v22 = vrot.slane %v444_v7, 1 }
 0x267   :  { %1015 = vmatmul.msk.bf16.vlgmr.msrb.gmra.mxu3 %vm122_vm1, %v501_v53 }
 0x268   :  { %v449_v56 = vadd.f32 %v448_v54, %v447_v52  ;;  %v446_v27 = vadd.f32 %v445_v22, %v444_v7 }
 0x26a   :  { %v431_v57 = vpop.f32.mrf.mxu1  ;;  %v450_v61 = vrot.slane %v449_v56, 2  ;;  %v468_v32 = vmul.f32 %v446_v27, %v1362_v17 }
 0x26b   :  { %v438_v58 = vmax.f32 %v431_v57, 0.0 }
 0x26c   :  { %v451_v1 = vadd.f32 %v450_v61, %v449_v56 }
 0x26d   :  { %v454_v60 = vsel %vm122_vm1, %v438_v58, 0.0 }
 0x26e   :  { %v455_v62 = vrot.slane %v454_v60, 4  ;;  %v452_v19 = vrot.slane %v451_v1, 1 }
 0x270   :  { %v456_v0 = vadd.f32 %v455_v62, %v454_v60  ;;  %v453_v24 = vadd.f32 %v452_v19, %v451_v1 }
 0x272   :  { %v457_v2 = vrot.slane %v456_v0, 2  ;;  %v433_v3 = vpop.f32.mrf.mxu1  ;;  %v469_v29 = vmul.f32 %v453_v24, %v1362_v17 }
 0x273   :  { %v439_v4 = vmax.f32 %v433_v3, 0.0  ;;  %v1543_v3 = vld [vmem:[%s1654_s11] sm:$0xff]  ;;  %s1182_s11 = smov 80  }
 0x274   :  { %v458_v8 = vadd.f32 %v457_v2, %v456_v0  ;;  %v476_v35 = vsel %vm166_vm3, %v469_v29, %v468_v32 }
 0x275   :  { %v461_v13 = vsel %vm122_vm1, %v439_v4, 0.0  ;;  %v502_v18 = vpack.c.bf16 %v439_v4, %v438_v58 }
 0x276   :  { %v462_v20 = vrot.slane %v461_v13, 4  ;;  %v459_v21 = vrot.slane %v458_v8, 1 }
 0x277   :  { %1016 = vmatmul.msk.bf16.gmra.mxu3 %vm122_vm1, %v502_v18 }
 0x278   :  { %v463_v23 = vadd.f32 %v462_v20, %v461_v13  ;;  %v460_v26 = vadd.f32 %v459_v21, %v458_v8 }
 0x27a   :  { %v464_v25 = vrot.slane %v463_v23, 2  ;;  %v470_v31 = vmul.f32 %v460_v26, %v1362_v17 }
 0x27c   :  { %v465_v28 = vadd.f32 %v464_v25, %v463_v23  ;;  %v477_v40 = vsel %vm168_vm4, %v470_v31, %v476_v35 }
 0x27e   :  { %v466_v30 = vrot.slane %v465_v28, 1 }
 0x280   :  { %v467_v33 = vadd.f32 %v466_v30, %v465_v28 }
 0x282   :  { %v471_v34 = vmul.f32 %v467_v33, %v1362_v17 }
 0x284   :  { %v478_v41 = vsel %vm170_vm5, %v471_v34, %v477_v40 }
 0x285   :  { %1014 = vmatmul.msk.f32.vlgmr.msrb.gmra.mxu0 %vm122_vm1, %v478_v41 }
 0x286   :  { %726 = vmatpush.msrb.mxu0 %v1535_v63 }
 0x288   :  { %727 = vmatpush.msrb.mxu0 %v1543_v3 }
 0x2ad   :  { %v376_v43 = vpop.permute.xlu2 %375 }
 0x2c5   :  { %v381_v44 = vpop.permute.xlu0 %380 }
 0x2c6   :  { %v371_v42 = vpop.permute.xlu1 %370 }
 0x2c7   :  { %374 = vst.msk [vmem:[#allocation2] sm:$0x1] %vm373_vm8, %v371_v42 }
 0x2c8   :  { %379 = vst.msk [vmem:[#allocation2 - $0x1] sm:$0x2] %vm378_vm9, %v376_v43 }
 0x2c9   :  { %384 = vst.msk [vmem:[#allocation2 - $0x2] sm:$0x4] %vm383_vm10, %v381_v44 }
 0x2ea   :  { %v518_v14 = vpop.f32.mrf.mxu3 }
 0x2eb   :  { %528 = vst.msk [vmem:[#allocation8] sm:$0xff] %vm92_vm0, %v518_v14  ;;  %v532_v16 = vsub.f32 %v518_v14, %v1301_v9 }
 0x2ed   :  { %v536_v48 = vmul.f32 %v532_v16, %v532_v16 }
 0x2ef   :  { %v538_v52 = vsel %vm92_vm0, %v536_v48, 0.0 }
 0x2f2   :  { %v520_v47 = vpop.f32.mrf.mxu3 }
 0x2f3   :  { %529 = vst.msk [vmem:[#allocation8 + $0x8] sm:$0xff] %vm92_vm0, %v520_v47  ;;  %v533_v49 = vsub.f32 %v520_v47, %v1306_v10  ;;  %v576_v50 = vpack.c.bf16 %v520_v47, %v518_v14 }
 0x2f5   :  { %v537_v51 = vmul.f32 %v533_v49, %v533_v49  ;;  %1017 = vmatmul.msk.bf16.vlgmr.msrb.gmra.mxu2 %vm92_vm0, %v576_v50 }
 0x2f7   :  { %v539_v53 = vsel %vm92_vm0, %v537_v51, 0.0 }
 0x2f8   :  { %v1510_v54 = vadd.f32 %v539_v53, %v538_v52 }
 0x2fa   :  { %v1512_v55 = vpop.f32.mrf.mxu3 }
 0x2fb   :  { %530 = vst.msk [vmem:[#allocation8 + $0x10] sm:$0xff] %vm92_vm0, %v1512_v55 }
 0x302   :  { %v1516_v56 = vpop.f32.mrf.mxu0  ;;  %v1518_v57 = vpop.f32.mrf.mxu3 }
 0x303   :  { %668 = vst.msk [vmem:[#allocation2 - $0x1] sm:$0x4] %vm361_vm6, %v1516_v56  ;;  %v577_v58 = vpack.c.bf16 %v1518_v57, %v1512_v55  ;;  %670 = vrot.lane.b32.xlu0 %v1516_v56, %s1178_s5  ;;  %s983_s5 = sshll.u32 %s1658_s15, 4  ;;  %s984_s5 = int_to_ptr.vmem [resolvable:$true] %s983_s5 }
 0x304   :  { %531 = vst.msk [vmem:[#allocation8 + $0x18] sm:$0xff] %vm92_vm0, %v1518_v57 }
 0x305   :  { %1018 = vmatmul.msk.bf16.gmra.mxu2 %vm92_vm0, %v577_v58  ;;  %977 = dma.vmem_to_hbm [thread:$0]  %s970_s27, 512, %s972_s10, [#allocation9], %s1175_s23, %s1175_s23, %s1176_s24  }
 0x315   :  { %1033 = vmatmul.msk.f32.vlgmr.msra.gmra.mxu2 %vm92_vm0, %v1516_v56 }
 0x375   :  { %v671_v59 = vpop.permute.xlu0 %670 }
 0x376   :  { %673 = vst.msk [vmem:[#allocation2 - $0x2] sm:$0x8] %vm367_vm7, %v671_v59 }
 0x378   :  { %v593_v60 = vpop.f32.mrf.mxu2 }
 0x379   :  { %v603_v61 = vmax.f32 %v593_v60, 0.0 }
 0x37b   :  { %v607_v1 = vsel %vm122_vm1, %v603_v61, 0.0  ;;  %v705_v61 = vld [vmem:[#allocation3 + $0x58] sm:$0xff] }
 0x37c   :  { %v608_v7 = vrot.slane %v607_v1, 4  ;;  %741 = vmatpush.msrb.mxu1 %v705_v61  ;;  %869 = vmatpush.msra.mxu3 %v705_v61 }
 0x37e   :  { %v609_v19 = vadd.f32 %v608_v7, %v607_v1  ;;  %v701_v1 = vld [vmem:[#allocation3 + $0x38] sm:$0xff]  ;;  %v698_v7 = vld [vmem:[#allocation3 + $0x20] sm:$0xff] }
 0x380   :  { %v595_v62 = vpop.f32.mrf.mxu2  ;;  %v610_v23 = vrot.slane %v609_v19, 2 }
 0x381   :  { %v604_v0 = vmax.f32 %v595_v62, 0.0  ;;  %v703_v62 = vld [vmem:[#allocation3 + $0x48] sm:$0xff] }
 0x382   :  { %v611_v29 = vadd.f32 %v610_v23, %v609_v19  ;;  %v695_v19 = vld [vmem:[#allocation3 + $0x8] sm:$0xff] }
 0x383   :  { %v614_v2 = vsel %vm122_vm1, %v604_v0, 0.0  ;;  %v702_v0 = vld [vmem:[#allocation3 + $0x40] sm:$0xff] }
 0x384   :  { %v615_v4 = vrot.slane %v614_v2, 4  ;;  %v612_v35 = vrot.slane %v611_v29, 1 }
 0x386   :  { %v616_v8 = vadd.f32 %v615_v4, %v614_v2  ;;  %v613_v44 = vadd.f32 %v612_v35, %v611_v29  ;;  %v700_v2 = vld [vmem:[#allocation3 + $0x30] sm:$0xff]  ;;  %v699_v4 = vld [vmem:[#allocation3 + $0x28] sm:$0xff] }
 0x388   :  { %v598_v13 = vpop.f32.mrf.mxu2  ;;  %v617_v21 = vrot.slane %v616_v8, 2  ;;  %v635_v49 = vmul.f32 %v613_v44, %v1362_v17  ;;  %v535_v44 = vsub.f32 %v1518_v57, %v1306_v10 }
 0x389   :  { %v605_v18 = vmax.f32 %v598_v13, 0.0  ;;  %v697_v13 = vld [vmem:[#allocation3 + $0x18] sm:$0xff] }
 0x38a   :  { %v618_v25 = vadd.f32 %v617_v21, %v616_v8 }
 0x38b   :  { %v621_v20 = vsel %vm122_vm1, %v605_v18, 0.0  ;;  %v696_v18 = vld [vmem:[#allocation3 + $0x10] sm:$0xff] }
 0x38c   :  { %v622_v22 = vrot.slane %v621_v20, 4  ;;  %v619_v32 = vrot.slane %v618_v25, 1 }
 0x38e   :  { %v623_v24 = vadd.f32 %v622_v22, %v621_v20  ;;  %v620_v41 = vadd.f32 %v619_v32, %v618_v25  ;;  %v694_v20 = vld [vmem:[#allocation3] sm:$0xff] }
 0x390   :  { %v624_v26 = vrot.slane %v623_v24, 2  ;;  %v600_v27 = vpop.f32.mrf.mxu2  ;;  %v636_v16 = vmul.f32 %v620_v41, %v1362_v17 }
 0x391   :  { %v606_v28 = vmax.f32 %v600_v27, 0.0 }
 0x392   :  { %v625_v30 = vadd.f32 %v624_v26, %v623_v24  ;;  %v643_v52 = vsel %vm166_vm3, %v636_v16, %v635_v49  ;;  %v551_v16 = vmul.f32 %v535_v44, %v535_v44 }
 0x393   :  { %v628_v31 = vsel %vm122_vm1, %v606_v28, 0.0 }
 0x394   :  { %v629_v33 = vrot.slane %v628_v31, 4  ;;  %v626_v34 = vrot.slane %v625_v30, 1 }
 0x396   :  { %v630_v40 = vadd.f32 %v629_v33, %v628_v31  ;;  %v627_v43 = vadd.f32 %v626_v34, %v625_v30 }
 0x398   :  { %v631_v42 = vrot.slane %v630_v40, 2  ;;  %v637_v48 = vmul.f32 %v627_v43, %v1362_v17 }
 0x39a   :  { %v632_v14 = vadd.f32 %v631_v42, %v630_v40  ;;  %v644_v53 = vsel %vm168_vm4, %v637_v48, %v643_v52 }
 0x39c   :  { %v633_v47 = vrot.slane %v632_v14, 1 }
 0x39e   :  { %v634_v50 = vadd.f32 %v633_v47, %v632_v14  ;;  %v534_v14 = vsub.f32 %v1512_v55, %v1301_v9 }
 0x3a0   :  { %v638_v51 = vmul.f32 %v634_v50, %v1362_v17  ;;  %v550_v49 = vmul.f32 %v534_v14, %v534_v14 }
 0x3a2   :  { %v645_v58 = vsel %vm170_vm5, %v638_v51, %v644_v53  ;;  %v553_v51 = vsel %vm92_vm0, %v551_v16, 0.0  ;;  %v552_v52 = vsel %vm92_vm0, %v550_v49, 0.0 }
 0x3a3   :  { %1019 = vmatmul.msk.f32.vlgmr.msra.gmra.mxu0 %vm122_vm1, %v645_v58  ;;  %v554_v53 = vadd.f32 %v553_v51, %v552_v52 }
 0x3a4   :  { %1022 = vmatpush.xpose.msk.msra.mxu0 %vm92_vm0, %v1478_v45 }
 0x3a8   :  { %1023 = vmatpush.xpose.msk.msra.mxu0 %vm92_vm0, %v1485_v11 }
 0x3ab   :  { %1020 = vmatmul.msk.f32.vlgmr.msrb.gmra.mxu0 %vm92_vm0, %v1385_v38 }
 0x3ac   :  { %1024 = vmatpush.xpose.msk.msra.mxu0 %vm92_vm0, %v1493_v15 }
 0x3b0   :  { %1025 = vmatpush.xpose.msk.msra.mxu0 %vm92_vm0, %v1501_v46 }
 0x3b3   :  { %1026 = vmatmul.msk.f32.vlgmr.msra.gmra.mxu0 %vm92_vm0, %v1385_v38  ;;  %v903_v38 = vpop.f32.mrf.mxu2 }
 0x3b4   :  { %v1576_v59 = vmul.f32 14.285714, %v903_v38 }
 0x3b6   :  { %v910_v60 = vsel %vm795_vm11, %v1576_v59, -inf }
 0x420   :  { %v665_v17 = vpop.f32.mrf.mxu0 }
 0x421   :  { %687 = vrot.lane.b32.xlu0 %v665_v17, %s1182_s11  ;;  %679 = vrot.lane.b32.xlu2 %v665_v17, %s1180_s18 }
 0x422   :  { %675 = vrot.lane.b32.xlu1 %v665_v17, %s1181_s19 }
 0x428   :  { %v729_v45 = vpop.f32.mrf.mxu0 }
 0x429   :  { %385 = vrot.lane.b32.xlu2 %v1438_v12, %s1182_s11  ;;  %v704_v12 = vld [vmem:[#allocation3 + $0x50] sm:$0xff]  ;;  %s1187_s11 = smov [#allocation10]  }
 0x42a   :  { %683 = vrot.lane.b32.xlu1 %v665_v17, %s1179_s17  ;;  %742 = vmatpush.msrb.mxu1 %v704_v12 }
 0x42b   :  { %870 = vmatpush.msra.mxu3 %v704_v12 }
 0x42c   :  { %743 = vmatpush.msrb.mxu1 %v703_v62 }
 0x42d   :  { %871 = vmatpush.msra.mxu3 %v703_v62 }
 0x42e   :  { %744 = vmatpush.msrb.mxu1 %v702_v0 }
 0x42f   :  { %872 = vmatpush.msra.mxu3 %v702_v0 }
 0x430   :  { %v787_v11 = vpop.f32.mrf.mxu0  ;;  %745 = vmatpush.msrb.mxu1 %v701_v1 }
 0x431   :  { %v1572_v15 = vmul.f32 14.285714, %v787_v11  ;;  %873 = vmatpush.msra.mxu3 %v701_v1  ;;  %v228_v1 = vsub.f32 %v1387_v39, %v1294_v6 }
 0x432   :  { %746 = vmatpush.msrb.mxu1 %v700_v2 }
 0x433   :  { %v796_v46 = vsel %vm795_vm11, %v1572_v15, -inf  ;;  %874 = vmatpush.msra.mxu3 %v700_v2  ;;  %v227_v2 = vsub.f32 %v1381_v37, %v1289_v5 }
 0x434   :  { %747 = vmatpush.msrb.mxu1 %v699_v4 }
 0x435   :  { %875 = vmatpush.msra.mxu3 %v699_v4 }
 0x436   :  { %748 = vmatpush.msrb.mxu1 %v698_v7 }
 0x437   :  { %876 = vmatpush.msra.mxu3 %v698_v7 }
 0x438   :  { %749 = vmatpush.msrb.mxu1 %v697_v13 }
 0x439   :  { %877 = vmatpush.msra.mxu3 %v697_v13 }
 0x43a   :  { %750 = vmatpush.msrb.mxu1 %v696_v18 }
 0x43b   :  { %878 = vmatpush.msra.mxu3 %v696_v18 }
 0x43c   :  { %751 = vmatpush.msrb.mxu1 %v695_v19 }
 0x43d   :  { %879 = vmatpush.msra.mxu3 %v695_v19  ;;  %v243_v19 = vmul.f32 %v227_v2, %v227_v2 }
 0x43e   :  { %752 = vmatpush.msrb.mxu1 %v694_v20 }
 0x43f   :  { %880 = vmatpush.msra.mxu3 %v694_v20  ;;  %v245_v6 = vsel %vm92_vm0, %v243_v19, 0.0 }
 0x440   :  { %855 = vmatpush.msra.mxu1 %v1535_v63 }
 0x442   :  { %856 = vmatpush.msra.mxu1 %v1543_v3 }
 0x452   :  { %797 = vmax.xlane.f32.xlu2 %v796_v46 }
 0x45a   :  { %911 = vmax.xlane.f32.xlu2 %v910_v60 }
 0x47b   :  { %v680_v8 = vpop.permute.xlu2 %679 }
 0x483   :  { %v386_v21 = vpop.permute.xlu2 %385 }
 0x484   :  { %389 = vst.msk [vmem:[#allocation2 - $0x3] sm:$0x8] %vm388_vm12, %v386_v21 }
 0x493   :  { %v688_v24 = vpop.permute.xlu0 %687 }
 0x494   :  { %v676_v22 = vpop.permute.xlu1 %675 }
 0x495   :  { %678 = vst.msk [vmem:[#allocation2 + $0x1] sm:$0x1] %vm373_vm8, %v676_v22 }
 0x496   :  { %682 = vst.msk [vmem:[#allocation2] sm:$0x2] %vm378_vm9, %v680_v8  ;;  %v244_v8 = vmul.f32 %v228_v1, %v228_v1 }
 0x498   :  { %v246_v21 = vsel %vm92_vm0, %v244_v8, 0.0 }
 0x499   :  { %v247_v39 = vadd.f32 %v246_v21, %v245_v6 }
 0x49c   :  { %v684_v23 = vpop.permute.xlu1 %683 }
 0x49d   :  { %686 = vst.msk [vmem:[#allocation2 - $0x1] sm:$0x4] %vm383_vm10, %v684_v23  ;;  %v1183_v23 = vmov 512.0  }
 0x49e   :  { %690 = vst.msk [vmem:[#allocation2 - $0x2] sm:$0x8] %vm388_vm12, %v688_v24 }
 0x4a5   :  { %v691_v25 = vld [vmem:[#allocation2] sm:$0x3] }
 0x4a6   :  { %v732_v26 = vmul.f32 %v729_v45, %v691_v25 }
 0x4a8   :  { %1021 = vmatmul.msk.f32.vlgmr.msrb.gmra.mxu1 %vm733_vm13, %v732_v26 }
 0x4b0   :  { %1027 = vmatmul.msk.f32.vlgmr.msra.gmra.mxu1 %vm92_vm0, %v1516_v56 }
 0x4c5   :  { %v798_v30 = vpop.xlane.xlu2 %797 }
 0x4cd   :  { %v912_v10 = vpop.xlane.xlu2 %911 }
 0x525   :  { %v754_v63 = vpop.f32.mrf.mxu1 }
 0x526   :  { %v1589_v3 = vmul.f32 14.285714, %v754_v63 }
 0x528   :  { %v792_v27 = vsel %vm791_vm14, %v1589_v3, -inf }
 0x529   :  { %793 = vmax.xlane.f32.xlu1 %v792_v27 }
 0x52d   :  { %v858_v28 = vpop.f32.mrf.mxu1 }
 0x52e   :  { %v861_v29 = vmul.f32 %v858_v28, %v691_v25 }
 0x530   :  { %1028 = vmatmul.msk.f32.vlgmr.msra.gmra.mxu3 %vm733_vm13, %v861_v29  ;;  %v1184_v29 = vmov 2.0  }
 0x59c   :  { %v794_v31 = vpop.xlane.xlu1 %793 }
 0x59d   :  { %v799_v32 = vmax.f32 %v794_v31, %v798_v30 }
 0x59f   :  { %v800_v33 = vsub.f32 %v1589_v3, %v799_v32  ;;  %v806_v34 = vsub.f32 %v1572_v15, %v799_v32 }
 0x5a1   :  { %v801_v35 = vmul.f32 1.442695, %v800_v33  ;;  %v807_v56 = vmul.f32 1.442695, %v806_v34 }
 0x5a3   :  { %1066 = vpow2.f32 %v801_v35 }
 0x5a4   :  { %1068 = vpow2.f32 %v807_v56 }
 0x5a9   :  { %v1067_v40 = vpop.eup %1066 }
 0x5aa   :  { %v1069_v41 = vpop.eup %1068  ;;  %v803_v42 = vsel %vm791_vm14, %v1067_v40, 0.0 }
 0x5ab   :  { %v809_v43 = vsel %vm795_vm11, %v1069_v41, 0.0  ;;  %804 = vadd.xlane.f32.xlu1 %v803_v42 }
 0x5ac   :  { %810 = vadd.xlane.f32.xlu2 %v809_v43 }
 0x5b3   :  { %v882_v47 = vpop.f32.mrf.mxu3 }
 0x5b4   :  { %v1601_v48 = vmul.f32 14.285714, %v882_v47  ;;  %234 = vadd.xlane.f32.xlu2 %v1379_v36 }
 0x5b6   :  { %v907_v50 = vsel %vm791_vm14, %v1601_v48, -inf }
 0x5b7   :  { %908 = vmax.xlane.f32.xlu0 %v907_v50 }
 0x5bc   :  { %555 = vadd.xlane.f32.xlu2 %v554_v53 }
 0x61e   :  { %v805_v36 = vpop.xlane.xlu1 %804 }
 0x61f   :  { %v811_v57 = vpop.xlane.xlu2 %810 }
 0x620   :  { %v812_v60 = vadd.f32 %v811_v57, %v805_v36 }
 0x627   :  { %v235_v9 = vpop.xlane.xlu2 %234 }
 0x628   :  { %v236_v55 = vrot.slane %v235_v9, 4 }
 0x62a   :  { %v237_v58 = vadd.f32 %v236_v55, %v235_v9  ;;  %v909_v17 = vpop.xlane.xlu0 %908 }
 0x62b   :  { %v1608_v45 = vmax.f32 %v909_v17, %v912_v10 }
 0x62c   :  { %v238_v11 = vrot.slane %v237_v58, 2 }
 0x62d   :  { %v914_v15 = vsub.f32 %v1601_v48, %v1608_v45  ;;  %v920_v46 = vsub.f32 %v1576_v59, %v1608_v45 }
 0x62e   :  { %v239_v38 = vadd.f32 %v238_v11, %v237_v58 }
 0x62f   :  { %v915_v61 = vmul.f32 1.442695, %v914_v15  ;;  %v921_v12 = vmul.f32 1.442695, %v920_v46  ;;  %v556_v24 = vpop.xlane.xlu2 %555 }
 0x630   :  { %v240_v62 = vrot.slane %v239_v38, 1  ;;  %v557_v27 = vrot.slane %v556_v24, 4 }
 0x631   :  { %1070 = vpow2.f32 %v915_v61 }
 0x632   :  { %1072 = vpow2.f32 %v921_v12  ;;  %v241_v0 = vadd.f32 %v240_v62, %v239_v38  ;;  %v558_v31 = vadd.f32 %v557_v27, %v556_v24 }
 0x633   :  { %1074 = vlog2.f32 %v812_v60 }
 0x634   :  { %1034 = vpush %v241_v0  ;;  %1076 = vrcp.f32 %v1183_v23  ;;  %v559_v56 = vrot.slane %v558_v31, 2 }
 0x635   :  { %1078 = vrcp.f32 %v1184_v29 }
 0x636   :  { %v560_v49 = vadd.f32 %v559_v56, %v558_v31 }
 0x637   :  { %v1071_v4 = vpop.eup %1070 }
 0x638   :  { %v1073_v7 = vpop.eup %1072  ;;  %v917_v59 = vsel %vm791_vm14, %v1071_v4, 0.0  ;;  %v561_v11 = vrot.slane %v560_v49, 1 }
 0x639   :  { %v1075_v13 = vpop.eup %1074  ;;  %918 = vadd.xlane.f32.xlu0 %v917_v59  ;;  %v923_v18 = vsel %vm795_vm11, %v1073_v7, 0.0 }
 0x63a   :  { %924 = vadd.xlane.f32.xlu1 %v923_v18  ;;  %v814_v20 = vmul.f32 0.6931472, %v1075_v13  ;;  %v1077_v25 = vpop.eup %1076 }
 0x63b   :  { %v259_v30 = vmul.f32 512.0, %v1077_v25  ;;  %vm263_vm0 = vweird.f32 %v1077_v25 }
 0x63c   :  { %v815_v22 = vadd.f32 %v814_v20, %v799_v32  ;;  %v1079_v32 = vpop.eup %1078 }
 0x63d   :  { %v829_v44 = vmul.f32 2.0, %v1079_v32  ;;  %vm833_vm1 = vweird.f32 %v1079_v32 }
 0x63e   :  { %v816_v5 = vsub.f32 %v815_v22, %v1589_v3 }
 0x63f   :  { %v830_v10 = vsub.f32 1.0, %v829_v44 }
 0x640   :  { %v818_v37 = vsel %vm817_vm15, %v816_v5, 0.0 }
 0x641   :  { %248 = vadd.xlane.f32.xlu0 %v247_v39  ;;  %v831_v38 = vmul.f32 %v1079_v32, %v830_v10 }
 0x642   :  { %541 = vadd.xlane.f32.xlu1 %v1510_v54  ;;  %v260_v54 = vsub.f32 1.0, %v259_v30 }
 0x643   :  { %v832_v62 = vadd.f32 %v1079_v32, %v831_v38 }
 0x644   :  { %v261_v43 = vmul.f32 %v1077_v25, %v260_v54 }
 0x645   :  { %v834_v2 = vsel %vm833_vm1, %v1079_v32, %v832_v62 }
 0x646   :  { %v262_v53 = vadd.f32 %v1077_v25, %v261_v43 }
 0x649   :  { %819 = vadd.xlane.f32.xlu0 %v818_v37 }
 0x665   :  { %s1035_s30 = spop %1034 }
 0x6ac   :  { %v919_v26 = vpop.xlane.xlu0 %918 }
 0x6ad   :  { %v925_v63 = vpop.xlane.xlu1 %924 }
 0x6ae   :  { %v926_v28 = vadd.f32 %v925_v63, %v919_v26 }
 0x6b0   :  { %1080 = vlog2.f32 %v926_v28 }
 0x6b4   :  { %v249_v3 = vpop.xlane.xlu0 %248 }
 0x6b5   :  { %v250_v33 = vrot.slane %v249_v3, 4  ;;  %v542_v34 = vpop.xlane.xlu1 %541 }
 0x6b6   :  { %v1081_v35 = vpop.eup %1080  ;;  %v543_v40 = vrot.slane %v542_v34, 4 }
 0x6b7   :  { %v928_v41 = vmul.f32 0.6931472, %v1081_v35  ;;  %v251_v42 = vadd.f32 %v250_v33, %v249_v3 }
 0x6b8   :  { %v544_v14 = vadd.f32 %v543_v40, %v542_v34 }
 0x6b9   :  { %v252_v16 = vrot.slane %v251_v42, 2  ;;  %v929_v47 = vadd.f32 %v928_v41, %v1608_v45  ;;  %v264_v45 = vsel %vm263_vm0, %v1077_v25, %v262_v53 }
 0x6ba   :  { %v545_v50 = vrot.slane %v544_v14, 2 }
 0x6bb   :  { %v930_v51 = vsub.f32 %v929_v47, %v1601_v48  ;;  %v253_v52 = vadd.f32 %v252_v16, %v251_v42  ;;  %v562_v48 = vadd.f32 %v561_v11, %v560_v49 }
 0x6bc   :  { %v820_v57 = vpop.xlane.xlu0 %819  ;;  %v546_v9 = vadd.f32 %v545_v50, %v544_v14 }
 0x6bd   :  { %v821_v55 = vrot.slane %v820_v57, 4  ;;  %v931_v58 = vsel %vm817_vm15, %v930_v51, 0.0  ;;  %v254_v17 = vrot.slane %v253_v52, 1 }
 0x6be   :  { %932 = vadd.xlane.f32.xlu1 %v931_v58  ;;  %v547_v36 = vrot.slane %v546_v9, 1 }
 0x6bf   :  { %v822_v15 = vadd.f32 %v821_v55, %v820_v57  ;;  %v255_v46 = vadd.f32 %v254_v17, %v253_v52 }
 0x6c0   :  { %v548_v60 = vadd.f32 %v547_v36, %v546_v9 }
 0x6c1   :  { %v823_v61 = vrot.slane %v822_v15, 2  ;;  %1036 = vpush %v255_v46 }
 0x6c2   :  { %1038 = vpush %v264_v45 }
 0x6c3   :  { %v824_v12 = vadd.f32 %v823_v61, %v822_v15  ;;  %1040 = vpush %v548_v60 }
 0x6c4   :  { %1042 = vpush %v562_v48 }
 0x6c5   :  { %v825_v0 = vrot.slane %v824_v12, 1 }
 0x6c7   :  { %v826_v1 = vadd.f32 %v825_v0, %v824_v12 }
 0x6c9   :  { %1044 = vpush %v826_v1 }
 0x6ca   :  { %1046 = vpush %v834_v2 }
 0x6f2   :  { %s1037_s16 = spop %1036 }
 0x6f3   :  { %s257_s17 = sadd.f32 %s1037_s16, %s1035_s30  ;;  %s1039_s18 = spop %1038 }
 0x6f4   :  { %s1041_s19 = spop %1040 }
 0x6f5   :  { %s266_s9 = smul.f32 %s1039_s18, %s257_s17  ;;  %s1043_s21 = spop %1042 }
 0x6f6   :  { %s564_s2 = sadd.f32 %s1043_s21, %s1041_s19 }
 0x6f7   :  { %268 = sst [smem:[#allocation10]] %s266_s9 }
 0x6f8   :  { %s573_s8 = smul.f32 %s1039_s18, %s564_s2 }
 0x6fa   :  { %575 = sst [smem:[#allocation10 + $0x1]] %s573_s8  ;;  %s1045_s25 = spop %1044 }
 0x6fb   :  { %s1047_s1 = spop %1046 }
 0x6fc   :  { %s836_s26 = smul.f32 %s1047_s1, %s1045_s25 }
 0x6fe   :  { %838 = sst [smem:[#allocation10 + $0x2]] %s836_s26 }
 0x731   :  { %v933_v4 = vpop.xlane.xlu1 %932 }
 0x732   :  { %v934_v7 = vrot.slane %v933_v4, 4 }
 0x734   :  { %v935_v8 = vadd.f32 %v934_v7, %v933_v4 }
 0x736   :  { %v936_v59 = vrot.slane %v935_v8, 2 }
 0x738   :  { %v937_v13 = vadd.f32 %v936_v59, %v935_v8 }
 0x73a   :  { %v938_v18 = vrot.slane %v937_v13, 1 }
 0x73c   :  { %v939_v19 = vadd.f32 %v938_v18, %v937_v13 }
 0x73e   :  { %1048 = vpush %v939_v19 }
 0x76f   :  { %s1049_s3 = spop %1048 }
 0x770   :  { %s949_s14 = smul.f32 %s1049_s3, %s1047_s1 }
 0x772   :  { %951 = sst [smem:[#allocation10 + $0x3]] %s949_s14 }
 0x773   :  { %986 = dma.smem_to_vmem %s1187_s11, 16, %s984_s5, [#allocation6]  }
 0x774   :  { %1168 = dma.done.wait [#allocation5], 512  }
 0x775   :  { %1169 = vsyncadd [#allocation5], 4294966784 }
 0x776   :  { %1170 = dma.done.wait [#allocation9], 512  }
 0x777   :  { %1171 = vsyncadd [#allocation9], 4294966784 }
 0x778   :  { %1172 = dma.done.wait [#allocation6], 16  }
 0x779   :  { %1173 = vsyncadd [#allocation6], 4294967280 }
 0x77a   :  { %999 = sfence }
 0x77b   :  { %1000 = vsyncpa [#allocation4], 1 }
 0x77c   :  { %1001 = vsyncpa [#allocation5], 1 }
 0x77d   :  { %1002 = vsyncpa [#allocation9], 1 }
 0x77e   :  { %1003 = vsyncpa [#allocation6], 1 }

</bundles_post_ra>
